<compile_context>
chip_gen: v5e
topology: v5e:2x2
jax: 0.10.0
libtpu: 0.0.40
codegen_flags: <defaults>
</compile_context>

<pallas_src>
import functools
import math

import numpy as np
import jax
import jax.numpy as jnp
from jax.experimental import pallas as pl
from jax.experimental.pallas import tpu as pltpu

NEG_INF = -1e30            # large-negative stand-in for float('-inf')
TM_ROWS = 512              # projection row tile: ~85% of HBM roofline at 512-1024 on
                           # v5e/v6e (128 MiB VMEM); keep 256-512 on v7x (64 MiB VMEM)
VMEM_LIMIT = 48 * 1024 * 1024   # safe on v7x (64 MiB physical); can go ~96 MiB on v5e/v6e


def _round_up(x, m):
    return ((x + m - 1) // m) * m


# --------------------------- row-tiled linear kernel ---------------------------

def _row_linear_kernel(*refs, has_ln, has_bias, has_res, eps):
    it = iter(refs)
    x_ref = next(it)
    if has_ln:
        g_ref, beta_ref = next(it), next(it)
    w_ref = next(it)
    if has_bias:
        b_ref = next(it)
    if has_res:
        r_ref = next(it)
    o_ref = next(it)

    x = x_ref[...]
    if has_ln:                                   # LayerNorm fused into the matmul (f32 stats)
        xf = x.astype(jnp.float32)
        mu = jnp.mean(xf, axis=-1, keepdims=True)
        var = jnp.mean((xf - mu) ** 2, axis=-1, keepdims=True)
        x = (xf - mu) * jax.lax.rsqrt(var + eps) * g_ref[...] + beta_ref[...]
    acc = jnp.dot(x.astype(jnp.bfloat16), w_ref[...],      # bf16 MXU, f32 accumulation
                  preferred_element_type=jnp.float32)
    if has_bias:
        acc = acc + b_ref[...]
    if has_res:                                  # fused residual add
        acc = acc + r_ref[...]
    o_ref[...] = acc.astype(o_ref.dtype)


def row_linear(x, w, b=None, *, ln=None, residual=None, eps=1e-5,
               tm=TM_ROWS, out_dtype=jnp.float32):
    """y = [LayerNorm](x) @ w [+ b] [+ residual], row-tiled over a 1-D 'parallel' grid.

    x: (M, K). w: (K, N) (stored/cast bf16 for the MXU). b: optional (N,).
    ln: optional (gamma, beta) fusing a LayerNorm over K before the matmul.
    residual: optional (M, N) added to the output. out_dtype: store dtype.
    """
    M, K = x.shape
    N = w.shape[1]
    Mp = _round_up(M, 8)
    if Mp != M:
        x = jnp.pad(x, ((0, Mp - M), (0, 0)))
        if residual is not None:
            residual = jnp.pad(residual, ((0, Mp - M), (0, 0)))
    tm = min(tm, Mp)

    in_specs = [pl.BlockSpec((tm, K), lambda i: (i, 0))]
    args = [x]
    if ln is not None:
        g, beta = ln
        in_specs += [pl.BlockSpec((1, K), lambda i: (0, 0)),
                     pl.BlockSpec((1, K), lambda i: (0, 0))]
        args += [g.reshape(1, K), beta.reshape(1, K)]
    # TODO(synk): on v7x mark the grid-invariant weight/bias/LN specs
    # pipeline_mode=pl.Buffered(1) to single-buffer them and free VMEM headroom.
    in_specs.append(pl.BlockSpec((K, N), lambda i: (0, 0)))
    args.append(w.astype(jnp.bfloat16))
    if b is not None:
        in_specs.append(pl.BlockSpec((1, N), lambda i: (0, 0)))
        args.append(b.reshape(1, N))
    if residual is not None:
        in_specs.append(pl.BlockSpec((tm, N), lambda i: (i, 0)))
        args.append(residual)

    out = pl.pallas_call(
        functools.partial(_row_linear_kernel, has_ln=ln is not None,
                          has_bias=b is not None, has_res=residual is not None, eps=eps),
        grid=(pl.cdiv(Mp, tm),),
        in_specs=in_specs,
        out_specs=pl.BlockSpec((tm, N), lambda i: (i, 0)),
        out_shape=jax.ShapeDtypeStruct((Mp, N), out_dtype),
        compiler_params=pltpu.CompilerParams(
            dimension_semantics=("parallel",),
            vmem_limit_bytes=VMEM_LIMIT),
    )(*args)
    return out[:M] if Mp != M else out


# ------------------------------- rel_shift helpers ------------------------------

def _rel_shift(bdf, T, impl):
    """Return bd with bd[i, j] = bdf[i, (T-1) + j - i] for i, j < T.

    bdf is (T, W) with W a 128-multiple >= 2T; indices never exceed 2T-2 so the
    roll wraparound content is never read.
    """
    W = bdf.shape[-1]
    if impl == "roll_pos":
        # pltpu.roll follows jnp.roll (positive shift -> higher indices):
        # row i rotated by (1 + i); all amounts in [1, T] < W.  Single XLU op.
        y = pltpu.roll(bdf, shift=1, axis=1, stride=1, stride_axis=0)
        return y[:, T:2 * T]
    if impl == "roll_neg":
        # opposite sign convention (positive shift -> lower indices):
        # row i left-rotated by (T-1-i).
        y = pltpu.roll(bdf, shift=T - 1, axis=1, stride=-1, stride_axis=0)
        return y[:, :T]
    # Fallback: log2(T) uniform rotations + per-row selects (always lowers).
    row = jax.lax.broadcasted_iota(jnp.int32, (T, 1), 0)
    s = (T - 1) - row
    x = bdf
    for kbit in range((T - 1).bit_length()):
        r = 1 << kbit
        rot = jnp.concatenate([x[:, r:], x[:, :r]], axis=1)   # uniform left-rotate by r
        x = jnp.where(((s >> kbit) & 1) == 1, rot, x)
    return x[:, :T]


def pick_rel_shift_impl():
    """Probe (outside jit) whether strided pltpu.roll lowers on this backend and which
    sign convention it uses; otherwise use the select-loop fallback."""
    T0, W0 = 8, 128
    x_np = np.arange(T0 * W0, dtype=np.float32).reshape(T0, W0)
    expected = np.stack([x_np[i, T0 - 1 - i: 2 * T0 - 1 - i] for i in range(T0)])
    for impl in ("roll_pos", "roll_neg"):
        def _probe_kernel(x_ref, o_ref, impl=impl):
            o_ref[...] = _rel_shift(x_ref[...], T0, impl)
        try:
            out = pl.pallas_call(
                _probe_kernel,
                out_shape=jax.ShapeDtypeStruct((T0, T0), jnp.float32),
            )(jnp.asarray(x_np))
            if np.allclose(np.asarray(jax.block_until_ready(out)), expected):
                return impl
        except Exception:
            pass
    return "select"


# ---------------------- fused relative-position attention ----------------------

def _relpos_attn_kernel(qkv_ref, p_ref, bu_ref, bv_ref, m_ref, o_ref, *,
                        heads, scale, rel_shift_impl):
    T, H3 = qkv_ref.shape
    H = H3 // 3
    dk = H // heads

    qkv = qkv_ref[...]                         # (T, 3H) bf16, lane-dense slab
    p = p_ref[...]                             # (W, H)  bf16, grid-invariant
    bu = bu_ref[...]                           # (1, H)  bf16
    bv = bv_ref[...]
    key_pad = m_ref[...] > 0.5                 # (1, T)  True where padded key

    dn = (((1,), (1,)), ((), ()))              # contract dk axis: (T,dk) x (X,dk) -> (T,X)

    for h in range(heads):                     # static unroll; heads sliced by columns
        sl = slice(h * dk, (h + 1) * dk)
        q = qkv[:, sl]                         # (T, dk) bf16
        k = qkv[:, H + h * dk: H + (h + 1) * dk]
        v = qkv[:, 2 * H + h * dk: 2 * H + (h + 1) * dk]
        qu = q + bu[:, sl]                     # pos_bias_u/v added here (q computed once)
        qv = q + bv[:, sl]

        ac = jax.lax.dot_general(qu, k, dn, preferred_element_type=jnp.float32)        # (T,T)
        bdf = jax.lax.dot_general(qv, p[:, sl], dn, preferred_element_type=jnp.float32)  # (T,W)
        bd = _rel_shift(bdf, T, rel_shift_impl)                                          # (T,T)

        scores = (ac + bd) * scale
        scores = jnp.where(key_pad, NEG_INF, scores)
        mx = jnp.max(scores, axis=-1, keepdims=True)
        e = jnp.exp(scores - mx)
        denom = jnp.sum(e, axis=-1, keepdims=True)
        probs = (e * pl.reciprocal(denom, approx=True)).astype(jnp.bfloat16)   # EUP recip
        ctx = jnp.dot(probs, v, preferred_element_type=jnp.float32)            # (T, dk)
        o_ref[:, sl] = ctx.astype(o_ref.dtype)


def relpos_attention(qkv, p, pos_u, pos_v, maskf, *, heads, scale, rel_shift_impl):
    """qkv: (B, T, 3H) bf16; p: (W, H) bf16; pos_u/pos_v: (1, H) bf16;
    maskf: (B, 1, T) f32 (1.0 = padded key). Returns (B, T, H) bf16."""
    B, T, H3 = qkv.shape
    H = H3 // 3
    W = p.shape[0]
    # TODO(synk): for very long sequences (earlier on v7x's 64 MiB VMEM, ~T>=768) add a
    # q-tile grid axis and stream KV blocks with an online softmax so the (T, W) f32
    # bd_full / (T, T) score tiles never exceed VMEM.
    return pl.pallas_call(
        functools.partial(_relpos_attn_kernel, heads=heads, scale=scale,
                          rel_shift_impl=rel_shift_impl),
        grid=(B,),
        in_specs=[pl.BlockSpec((None, T, H3), lambda b: (b, 0, 0)),
                  pl.BlockSpec((W, H), lambda b: (0, 0)),       # grid-invariant
                  pl.BlockSpec((1, H), lambda b: (0, 0)),       # grid-invariant
                  pl.BlockSpec((1, H), lambda b: (0, 0)),       # grid-invariant
                  pl.BlockSpec((None, 1, T), lambda b: (b, 0, 0))],
        out_specs=pl.BlockSpec((None, T, H), lambda b: (b, 0, 0)),
        out_shape=jax.ShapeDtypeStruct((B, T, H), jnp.bfloat16),
        compiler_params=pltpu.CompilerParams(
            dimension_semantics=("parallel",),    # megacore-shardable over batch
            vmem_limit_bytes=VMEM_LIMIT),
    )(qkv, p, pos_u, pos_v, maskf)


# -------------------------------- module glue ----------------------------------

def prepare_params(params):
    """Hoist weight concat + bf16 casts out of the jitted per-call path."""
    H = params['wq'].shape[0]
    return {
        'ln_g': params['ln_g'], 'ln_b': params['ln_b'],
        'w_qkv': jnp.concatenate([params['wq'], params['wk'], params['wv']],
                                 axis=1).astype(jnp.bfloat16),            # (H, 3H)
        'b_qkv': jnp.concatenate([params['bq'], params['bk'], params['bv']], axis=0),
        'wpos': params['wpos'].astype(jnp.bfloat16),
        'wo': params['wo'].astype(jnp.bfloat16),
        'bo': params['bo'],
        'pos_u': params['pos_u'].reshape(1, H).astype(jnp.bfloat16),
        'pos_v': params['pos_v'].reshape(1, H).astype(jnp.bfloat16),
    }


def mha_module(prep, x, pos_emb, padding_mask, *, heads, rel_shift_impl="select"):
    """MHAModule forward.  x: (T, B, H); pos_emb: (1, 2T-1, H);
    padding_mask: (B, T) bool, True = padded key position.  Returns (T, B, H)."""
    T, B, H = x.shape
    dk = H // heads
    L = pos_emb.shape[1]
    assert L == 2 * T - 1
    W = _round_up(L, 128)      # 128-aligned width so rel_shift is a clean lane rotation

    # Only layout change left in XLA is the module-boundary (T,B,H) <-> (B,T,H) swap;
    # the (B,NH,T,dk) qkv/ctx transposes of the previous version are gone.
    x_rows = jnp.transpose(x, (1, 0, 2)).reshape(B * T, H)

    # Fused LayerNorm + single {q,k,v} projection, bf16 output (no q duplication:
    # pos_bias_u/v are applied inside the attention kernel).
    qkv = row_linear(x_rows, prep['w_qkv'], prep['b_qkv'],
                     ln=(prep['ln_g'], prep['ln_b']), out_dtype=jnp.bfloat16)
    qkv = qkv.reshape(B, T, 3 * H)

    # Positional projection (no bias), padded to W rows (pad rows are never read).
    pos_pad = jnp.pad(pos_emb.reshape(L, H), ((0, W - L), (0, 0)))
    p = row_linear(pos_pad, prep['wpos'], None, out_dtype=jnp.bfloat16)    # (W, H)

    maskf = padding_mask.astype(jnp.float32).reshape(B, 1, T)

    # Fused scores + rel_shift + mask + softmax + context; output already (B, T, H).
    ctx = relpos_attention(qkv, p, prep['pos_u'], prep['pos_v'], maskf,
                           heads=heads, scale=1.0 / math.sqrt(dk),
                           rel_shift_impl=rel_shift_impl)

    # Output projection with the residual add fused in (dropout = identity).
    out = row_linear(ctx.reshape(B * T, H), prep['wo'], prep['bo'],
                     residual=x_rows, out_dtype=jnp.float32)
    return jnp.transpose(out.reshape(B, T, H), (1, 0, 2))


# ----------------------------- pure-jnp reference -------------------------------

def mha_module_ref(params, x, pos_emb, padding_mask, *, heads):
    """f32 reference mirroring the PyTorch module op-for-op (rel_shift via pad/reshape)."""
    T, B, H = x.shape
    dk = H // heads
    mu = jnp.mean(x, axis=-1, keepdims=True)
    var = jnp.mean((x - mu) ** 2, axis=-1, keepdims=True)
    xn = (x - mu) / jnp.sqrt(var + 1e-5) * params['ln_g'] + params['ln_b']
    xb = jnp.transpose(xn, (1, 0, 2))                                   # (B, T, H)

    def split(z):
        return z.reshape(B, T, heads, dk).transpose(0, 2, 1, 3)

    q = split(xb @ params['wq'] + params['bq'])
    k = split(xb @ params['wk'] + params['bk'])
    v = split(xb @ params['wv'] + params['bv'])
    p = (pos_emb @ params['wpos']).reshape(-1, heads, dk).transpose(1, 0, 2)

    qu = q + params['pos_u'][None, :, None, :]
    qv = q + params['pos_v'][None, :, None, :]
    ac = jnp.einsum('bhid,bhjd->bhij', qu, k)
    bd = jnp.einsum('bhid,hmd->bhim', qv, p)
    bsz, nh, t, l = bd.shape
    zero_pad = jnp.zeros((bsz, nh, t, 1), bd.dtype)
    bd_p = jnp.concatenate([zero_pad, bd], axis=-1).reshape(bsz, nh, l + 1, t)
    bd = bd_p[:, :, 1:].reshape(bsz, nh, t, l)[:, :, :, :t]
    scores = (ac + bd) / math.sqrt(dk)
    scores = jnp.where(padding_mask[:, None, None, :], NEG_INF, scores)
    probs = jax.nn.softmax(scores, axis=-1)
    ctx = jnp.einsum('bhij,bhjd->bhid', probs, v)
    ctx = ctx.transpose(0, 2, 1, 3).reshape(B, T, H)
    out = ctx @ params['wo'] + params['bo']
    return x + jnp.transpose(out, (1, 0, 2))


# ------------------------------ inputs / params ---------------------------------

def rel_positional_encoding(T, d, max_len=5000):
    """espnet RelPositionalEncoding table, sliced to (1, 2T-1, d)."""
    position = np.arange(max_len, dtype=np.float32)[:, None]
    div_term = np.exp(np.arange(0, d, 2, dtype=np.float32) * -(math.log(10000.0) / d))
    pe_pos = np.zeros((max_len, d), np.float32)
    pe_neg = np.zeros((max_len, d), np.float32)
    pe_pos[:, 0::2] = np.sin(position * div_term)
    pe_pos[:, 1::2] = np.cos(position * div_term)
    pe_neg[:, 0::2] = np.sin(-position * div_term)
    pe_neg[:, 1::2] = np.cos(-position * div_term)
    pe = np.concatenate([np.flip(pe_pos, axis=0)[None], pe_neg[1:][None]], axis=1)
    c = pe.shape[1] // 2
    return jnp.asarray(pe[:, c - T + 1: c + T])


def init_params(key, *, H, heads):
    dk = H // heads
    ks = jax.random.split(key, 13)
    w = lambda k, shape, s: jax.random.normal(k, shape, jnp.float32) * s
    return {
        'ln_g': 1.0 + 0.1 * w(ks[11], (H,), 1.0),
        'ln_b': 0.1 * w(ks[12], (H,), 1.0),
        'wq': w(ks[0], (H, H), 0.08), 'bq': w(ks[1], (H,), 0.05),
        'wk': w(ks[2], (H, H), 0.08), 'bk': w(ks[3], (H,), 0.05),
        'wv': w(ks[4], (H, H), 0.08), 'bv': w(ks[5], (H,), 0.05),
        'wo': w(ks[6], (H, H), 0.08), 'bo': w(ks[7], (H,), 0.05),
        'wpos': w(ks[8], (H, H), 0.08),
        'pos_u': w(ks[9], (heads, dk), 0.2),
        'pos_v': w(ks[10], (heads, dk), 0.2),
    }


# ------------------------------------ main ---------------------------------------

if __name__ == "__main__":
    T, B, H, HEADS = 16, 2, 32, 4
    key = jax.random.PRNGKey(0)
    kx, kp = jax.random.split(key)

    x = jax.random.normal(kx, (T, B, H), jnp.float32)          # (time, batch, embed)
    pos_emb = rel_positional_encoding(T, H)                    # (1, 2T-1, H)
    padding_mask = jnp.zeros((B, T), dtype=bool).at[0, 12:].set(True)  # True = padding

    params = init_params(kp, H=H, heads=HEADS)
    prep = prepare_params(params)

    rel_shift_impl = pick_rel_shift_impl()       # strided pltpu.roll if it lowers here

    fwd = jax.jit(functools.partial(mha_module, heads=HEADS,
                                    rel_shift_impl=rel_shift_impl))
    out = jax.block_until_ready(fwd(prep, x, pos_emb, padding_mask))

    assert out.shape == (T, B, H), out.shape
    assert bool(jnp.all(jnp.isfinite(out)))

    ref = mha_module_ref(params, x, pos_emb, padding_mask, heads=HEADS)
    np.testing.assert_allclose(np.asarray(out), np.asarray(ref), rtol=3e-2, atol=3e-2)
    print("KERNEL_OK")
</pallas_src>

<mosaic_0001>
module attributes {stable_mosaic.version = 11 : i64} {
  func.func @_probe_kernel(%arg0: memref<8x128xf32, #tpu.memory_space<vmem>>, %arg1: memref<8x8xf32, #tpu.memory_space<vmem>>) attributes {dimension_semantics = [], scalar_prefetch = 0 : i64, scratch_operands = 0 : i64, tpu.core_type = #tpu.core_type<tc>} {
    %c0 = arith.constant 0 : index
    %c0_0 = arith.constant 0 : index
    %0 = vector.load %arg0[%c0, %c0_0] : memref<8x128xf32, #tpu.memory_space<vmem>>, vector<8x128xf32>
    %c1_i32 = arith.constant 1 : i32
    %1 = tpu.dynamic_rotate %0 by %c1_i32 dim 1 {stride = 1 : si32, stride_dimension = 0 : si32} : vector<8x128xf32>, i32 -> vector<8x128xf32>
    %2 = vector.extract_strided_slice %1 {offsets = [0, 8], sizes = [8, 8], strides = [1, 1]} : vector<8x128xf32> to vector<8x8xf32>
    %c0_1 = arith.constant 0 : index
    %c0_2 = arith.constant 0 : index
    %3 = vector.load %arg1[%c0_1, %c0_2] : memref<8x8xf32, #tpu.memory_space<vmem>>, vector<8x8xf32>
    tpu.vector_store %arg1[%c0_1, %c0_2], %2 {strides = array<i32>} : memref<8x8xf32, #tpu.memory_space<vmem>>, vector<8x8xf32>,
    return
  }
}

module attributes {stable_mosaic.version = 11 : i64} {
  func.func @_row_linear_kernel(%arg0: i32, %arg1: memref<128x32xf32, #tpu.memory_space<vmem>>, %arg2: memref<32x32xbf16, #tpu.memory_space<vmem>>, %arg3: memref<128x32xbf16, #tpu.memory_space<vmem>>) attributes {dimension_semantics = [#tpu.dimension_semantics<parallel>], iteration_bounds = array<i64: 1>, scalar_prefetch = 0 : i64, scratch_operands = 0 : i64, tpu.core_type = #tpu.core_type<tc>, window_params = [{transform_indices = @transform_0, window_bounds = array<i64: 128, 32>}, {pipeline_mode = #tpu.pipeline_mode<synchronous>, transform_indices = @transform_1, window_bounds = array<i64: 32, 32>}, {transform_indices = @transform_2, window_bounds = array<i64: 128, 32>}]} {
    %c0 = arith.constant 0 : index
    %c0_0 = arith.constant 0 : index
    %0 = vector.load %arg1[%c0, %c0_0] : memref<128x32xf32, #tpu.memory_space<vmem>>, vector<128x32xf32>
    %1 = arith.truncf %0 : vector<128x32xf32> to vector<128x32xbf16>
    %c0_1 = arith.constant 0 : index
    %c0_2 = arith.constant 0 : index
    %2 = vector.load %arg2[%c0_1, %c0_2] : memref<32x32xbf16, #tpu.memory_space<vmem>>, vector<32x32xbf16>
    %cst = arith.constant dense<0.000000e+00> : vector<128x32xf32>
    %3 = tpu.matmul %1, %2, %cst {dimension_numbers = #tpu.dot_dimension_numbers<[1], [0], [0], [1], [0, 0, 1, 1], [], []>} : vector<128x32xbf16>, vector<32x32xbf16>, vector<128x32xf32> -> vector<128x32xf32>
    %4 = arith.truncf %3 : vector<128x32xf32> to vector<128x32xbf16>
    %c0_3 = arith.constant 0 : index
    %c0_4 = arith.constant 0 : index
    %5 = vector.load %arg3[%c0_3, %c0_4] : memref<128x32xbf16, #tpu.memory_space<vmem>>, vector<128x32xbf16>
    tpu.vector_store %arg3[%c0_3, %c0_4], %4 {strides = array<i32>} : memref<128x32xbf16, #tpu.memory_space<vmem>>, vector<128x32xbf16>,
    return
  }
  func.func @transform_0(%arg0: i32) -> (i32, i32) {
    %c0_i32 = arith.constant 0 : i32
    %c0_i32_0 = arith.constant 0 : i32
    return %arg0, %c0_i32 : i32, i32
  }
  func.func @transform_1(%arg0: i32) -> (i32, i32) {
    %c0_i32 = arith.constant 0 : i32
    %c0_i32_0 = arith.constant 0 : i32
    %c0_i32_1 = arith.constant 0 : i32
    return %c0_i32, %c0_i32_0 : i32, i32
  }
  func.func @transform_2(%arg0: i32) -> (i32, i32) {
    %c0_i32 = arith.constant 0 : i32
    %c0_i32_0 = arith.constant 0 : i32
    return %arg0, %c0_i32 : i32, i32
  }
}

module attributes {stable_mosaic.version = 11 : i64} {
  func.func @_row_linear_kernel(%arg0: i32, %arg1: memref<32x32xf32, #tpu.memory_space<vmem>>, %arg2: memref<1x32xf32, #tpu.memory_space<vmem>>, %arg3: memref<1x32xf32, #tpu.memory_space<vmem>>, %arg4: memref<32x96xbf16, #tpu.memory_space<vmem>>, %arg5: memref<1x96xf32, #tpu.memory_space<vmem>>, %arg6: memref<32x96xbf16, #tpu.memory_space<vmem>>) attributes {dimension_semantics = [#tpu.dimension_semantics<parallel>], iteration_bounds = array<i64: 1>, scalar_prefetch = 0 : i64, scratch_operands = 0 : i64, tpu.core_type = #tpu.core_type<tc>, window_params = [{transform_indices = @transform_0, window_bounds = array<i64: 32, 32>}, {pipeline_mode = #tpu.pipeline_mode<synchronous>, transform_indices = @transform_1, window_bounds = array<i64: 1, 32>}, {pipeline_mode = #tpu.pipeline_mode<synchronous>, transform_indices = @transform_2, window_bounds = array<i64: 1, 32>}, {pipeline_mode = #tpu.pipeline_mode<synchronous>, transform_indices = @transform_3, window_bounds = array<i64: 32, 96>}, {pipeline_mode = #tpu.pipeline_mode<synchronous>, transform_indices = @transform_4, window_bounds = array<i64: 1, 96>}, {transform_indices = @transform_5, window_bounds = array<i64: 32, 96>}]} {
    %c0 = arith.constant 0 : index
    %c0_0 = arith.constant 0 : index
    %0 = vector.load %arg1[%c0, %c0_0] : memref<32x32xf32, #tpu.memory_space<vmem>>, vector<32x32xf32>
    %cst = arith.constant dense<0.000000e+00> : vector<32xf32>
    %1 = vector.multi_reduction <add>, %0, %cst [1] : vector<32x32xf32> to vector<32xf32>
    %2 = vector.shape_cast %1 : vector<32xf32> to vector<32x1xf32>
    %cst_1 = arith.constant 3.200000e+01 : f32
    %3 = vector.broadcast %cst_1 : f32 to vector<32x1xf32>
    %4 = arith.divf %2, %3 : vector<32x1xf32>
    %5 = vector.broadcast %4 : vector<32x1xf32> to vector<32x32xf32>
    %6 = arith.subf %0, %5 : vector<32x32xf32>
    %7 = arith.mulf %6, %6 : vector<32x32xf32>
    %cst_2 = arith.constant dense<0.000000e+00> : vector<32xf32>
    %8 = vector.multi_reduction <add>, %7, %cst_2 [1] : vector<32x32xf32> to vector<32xf32>
    %9 = vector.shape_cast %8 : vector<32xf32> to vector<32x1xf32>
    %cst_3 = arith.constant 3.200000e+01 : f32
    %10 = vector.broadcast %cst_3 : f32 to vector<32x1xf32>
    %11 = arith.divf %9, %10 : vector<32x1xf32>
    %12 = vector.broadcast %4 : vector<32x1xf32> to vector<32x32xf32>
    %13 = arith.subf %0, %12 : vector<32x32xf32>
    %cst_4 = arith.constant 9.99999974E-6 : f32
    %14 = vector.broadcast %cst_4 : f32 to vector<32x1xf32>
    %15 = arith.addf %11, %14 : vector<32x1xf32>
    %16 = math.rsqrt %15 : vector<32x1xf32>
    %17 = vector.broadcast %16 : vector<32x1xf32> to vector<32x32xf32>
    %18 = arith.mulf %13, %17 : vector<32x32xf32>
    %c0_5 = arith.constant 0 : index
    %c0_6 = arith.constant 0 : index
    %19 = vector.load %arg2[%c0_5, %c0_6] : memref<1x32xf32, #tpu.memory_space<vmem>>, vector<1x32xf32>
    %20 = vector.broadcast %19 : vector<1x32xf32> to vector<32x32xf32>
    %21 = arith.mulf %18, %20 : vector<32x32xf32>
    %c0_7 = arith.constant 0 : index
    %c0_8 = arith.constant 0 : index
    %22 = vector.load %arg3[%c0_7, %c0_8] : memref<1x32xf32, #tpu.memory_space<vmem>>, vector<1x32xf32>
    %23 = vector.broadcast %22 : vector<1x32xf32> to vector<32x32xf32>
    %24 = arith.addf %21, %23 : vector<32x32xf32>
    %25 = arith.truncf %24 : vector<32x32xf32> to vector<32x32xbf16>
    %c0_9 = arith.constant 0 : index
    %c0_10 = arith.constant 0 : index
    %26 = vector.load %arg4[%c0_9, %c0_10] : memref<32x96xbf16, #tpu.memory_space<vmem>>, vector<32x96xbf16>
    %cst_11 = arith.constant dense<0.000000e+00> : vector<32x96xf32>
    %27 = tpu.matmul %25, %26, %cst_11 {dimension_numbers = #tpu.dot_dimension_numbers<[1], [0], [0], [1], [0, 0, 1, 1], [], []>} : vector<32x32xbf16>, vector<32x96xbf16>, vector<32x96xf32> -> vector<32x96xf32>
    %c0_12 = arith.constant 0 : index
    %c0_13 = arith.constant 0 : index
    %28 = vector.load %arg5[%c0_12, %c0_13] : memref<1x96xf32, #tpu.memory_space<vmem>>, vector<1x96xf32>
    %29 = vector.broadcast %28 : vector<1x96xf32> to vector<32x96xf32>
    %30 = arith.addf %27, %29 : vector<32x96xf32>
    %31 = arith.truncf %30 : vector<32x96xf32> to vector<32x96xbf16>
    %c0_14 = arith.constant 0 : index
    %c0_15 = arith.constant 0 : index
    %32 = vector.load %arg6[%c0_14, %c0_15] : memref<32x96xbf16, #tpu.memory_space<vmem>>, vector<32x96xbf16>
    tpu.vector_store %arg6[%c0_14, %c0_15], %31 {strides = array<i32>} : memref<32x96xbf16, #tpu.memory_space<vmem>>, vector<32x96xbf16>,
    return
  }
  func.func @transform_0(%arg0: i32) -> (i32, i32) {
    %c0_i32 = arith.constant 0 : i32
    %c0_i32_0 = arith.constant 0 : i32
    return %arg0, %c0_i32 : i32, i32
  }
  func.func @transform_1(%arg0: i32) -> (i32, i32) {
    %c0_i32 = arith.constant 0 : i32
    %c0_i32_0 = arith.constant 0 : i32
    %c0_i32_1 = arith.constant 0 : i32
    return %c0_i32, %c0_i32_0 : i32, i32
  }
  func.func @transform_2(%arg0: i32) -> (i32, i32) {
    %c0_i32 = arith.constant 0 : i32
    %c0_i32_0 = arith.constant 0 : i32
    %c0_i32_1 = arith.constant 0 : i32
    return %c0_i32, %c0_i32_0 : i32, i32
  }
  func.func @transform_3(%arg0: i32) -> (i32, i32) {
    %c0_i32 = arith.constant 0 : i32
    %c0_i32_0 = arith.constant 0 : i32
    %c0_i32_1 = arith.constant 0 : i32
    return %c0_i32, %c0_i32_0 : i32, i32
  }
  func.func @transform_4(%arg0: i32) -> (i32, i32) {
    %c0_i32 = arith.constant 0 : i32
    %c0_i32_0 = arith.constant 0 : i32
    %c0_i32_1 = arith.constant 0 : i32
    return %c0_i32, %c0_i32_0 : i32, i32
  }
  func.func @transform_5(%arg0: i32) -> (i32, i32) {
    %c0_i32 = arith.constant 0 : i32
    %c0_i32_0 = arith.constant 0 : i32
    return %arg0, %c0_i32 : i32, i32
  }
}

module attributes {stable_mosaic.version = 11 : i64} {
  func.func @_row_linear_kernel(%arg0: i32, %arg1: memref<32x32xbf16, #tpu.memory_space<vmem>>, %arg2: memref<32x32xbf16, #tpu.memory_space<vmem>>, %arg3: memref<1x32xf32, #tpu.memory_space<vmem>>, %arg4: memref<32x32xf32, #tpu.memory_space<vmem>>, %arg5: memref<32x32xf32, #tpu.memory_space<vmem>>) attributes {dimension_semantics = [#tpu.dimension_semantics<parallel>], iteration_bounds = array<i64: 1>, scalar_prefetch = 0 : i64, scratch_operands = 0 : i64, tpu.core_type = #tpu.core_type<tc>, window_params = [{transform_indices = @transform_0, window_bounds = array<i64: 32, 32>}, {pipeline_mode = #tpu.pipeline_mode<synchronous>, transform_indices = @transform_1, window_bounds = array<i64: 32, 32>}, {pipeline_mode = #tpu.pipeline_mode<synchronous>, transform_indices = @transform_2, window_bounds = array<i64: 1, 32>}, {transform_indices = @transform_3, window_bounds = array<i64: 32, 32>}, {transform_indices = @transform_4, window_bounds = array<i64: 32, 32>}]} {
    %c0 = arith.constant 0 : index
    %c0_0 = arith.constant 0 : index
    %0 = vector.load %arg1[%c0, %c0_0] : memref<32x32xbf16, #tpu.memory_space<vmem>>, vector<32x32xbf16>
    %c0_1 = arith.constant 0 : index
    %c0_2 = arith.constant 0 : index
    %1 = vector.load %arg2[%c0_1, %c0_2] : memref<32x32xbf16, #tpu.memory_space<vmem>>, vector<32x32xbf16>
    %cst = arith.constant dense<0.000000e+00> : vector<32x32xf32>
    %2 = tpu.matmul %0, %1, %cst {dimension_numbers = #tpu.dot_dimension_numbers<[1], [0], [0], [1], [0, 0, 1, 1], [], []>} : vector<32x32xbf16>, vector<32x32xbf16>, vector<32x32xf32> -> vector<32x32xf32>
    %c0_3 = arith.constant 0 : index
    %c0_4 = arith.constant 0 : index
    %3 = vector.load %arg3[%c0_3, %c0_4] : memref<1x32xf32, #tpu.memory_space<vmem>>, vector<1x32xf32>
    %4 = vector.broadcast %3 : vector<1x32xf32> to vector<32x32xf32>
    %5 = arith.addf %2, %4 : vector<32x32xf32>
    %c0_5 = arith.constant 0 : index
    %c0_6 = arith.constant 0 : index
    %6 = vector.load %arg4[%c0_5, %c0_6] : memref<32x32xf32, #tpu.memory_space<vmem>>, vector<32x32xf32>
    %7 = arith.addf %5, %6 : vector<32x32xf32>
    %c0_7 = arith.constant 0 : index
    %c0_8 = arith.constant 0 : index
    %8 = vector.load %arg5[%c0_7, %c0_8] : memref<32x32xf32, #tpu.memory_space<vmem>>, vector<32x32xf32>
    tpu.vector_store %arg5[%c0_7, %c0_8], %7 {strides = array<i32>} : memref<32x32xf32, #tpu.memory_space<vmem>>, vector<32x32xf32>,
    return
  }
  func.func @transform_0(%arg0: i32) -> (i32, i32) {
    %c0_i32 = arith.constant 0 : i32
    %c0_i32_0 = arith.constant 0 : i32
    return %arg0, %c0_i32 : i32, i32
  }
  func.func @transform_1(%arg0: i32) -> (i32, i32) {
    %c0_i32 = arith.constant 0 : i32
    %c0_i32_0 = arith.constant 0 : i32
    %c0_i32_1 = arith.constant 0 : i32
    return %c0_i32, %c0_i32_0 : i32, i32
  }
  func.func @transform_2(%arg0: i32) -> (i32, i32) {
    %c0_i32 = arith.constant 0 : i32
    %c0_i32_0 = arith.constant 0 : i32
    %c0_i32_1 = arith.constant 0 : i32
    return %c0_i32, %c0_i32_0 : i32, i32
  }
  func.func @transform_3(%arg0: i32) -> (i32, i32) {
    %c0_i32 = arith.constant 0 : i32
    %c0_i32_0 = arith.constant 0 : i32
    return %arg0, %c0_i32 : i32, i32
  }
  func.func @transform_4(%arg0: i32) -> (i32, i32) {
    %c0_i32 = arith.constant 0 : i32
    %c0_i32_0 = arith.constant 0 : i32
    return %arg0, %c0_i32 : i32, i32
  }
}

module attributes {stable_mosaic.version = 11 : i64} {
  func.func @_relpos_attn_kernel(%arg0: i32, %arg1: memref<1x16x96xbf16, #tpu.memory_space<vmem>>, %arg2: memref<128x32xbf16, #tpu.memory_space<vmem>>, %arg3: memref<1x32xbf16, #tpu.memory_space<vmem>>, %arg4: memref<1x32xbf16, #tpu.memory_space<vmem>>, %arg5: memref<1x1x16xf32, #tpu.memory_space<vmem>>, %arg6: memref<1x16x32xbf16, #tpu.memory_space<vmem>>) attributes {dimension_semantics = [#tpu.dimension_semantics<parallel>], iteration_bounds = array<i64: 2>, scalar_prefetch = 0 : i64, scratch_operands = 0 : i64, tpu.core_type = #tpu.core_type<tc>, window_params = [{transform_indices = @transform_0, window_bounds = array<i64: 1, 16, 96>}, {pipeline_mode = #tpu.pipeline_mode<synchronous>, transform_indices = @transform_1, window_bounds = array<i64: 128, 32>}, {pipeline_mode = #tpu.pipeline_mode<synchronous>, transform_indices = @transform_2, window_bounds = array<i64: 1, 32>}, {pipeline_mode = #tpu.pipeline_mode<synchronous>, transform_indices = @transform_3, window_bounds = array<i64: 1, 32>}, {transform_indices = @transform_4, window_bounds = array<i64: 1, 1, 16>}, {transform_indices = @transform_5, window_bounds = array<i64: 1, 16, 32>}]} {
    %c0 = arith.constant 0 : index
    %c0_0 = arith.constant 0 : index
    %c0_1 = arith.constant 0 : index
    %0 = vector.load %arg1[%c0, %c0_0, %c0_1] : memref<1x16x96xbf16, #tpu.memory_space<vmem>>, vector<1x16x96xbf16>
    %1 = vector.shape_cast %0 : vector<1x16x96xbf16> to vector<16x96xbf16>
    %c0_2 = arith.constant 0 : index
    %c0_3 = arith.constant 0 : index
    %2 = vector.load %arg2[%c0_2, %c0_3] : memref<128x32xbf16, #tpu.memory_space<vmem>>, vector<128x32xbf16>
    %c0_4 = arith.constant 0 : index
    %c0_5 = arith.constant 0 : index
    %3 = vector.load %arg3[%c0_4, %c0_5] : memref<1x32xbf16, #tpu.memory_space<vmem>>, vector<1x32xbf16>
    %c0_6 = arith.constant 0 : index
    %c0_7 = arith.constant 0 : index
    %4 = vector.load %arg4[%c0_6, %c0_7] : memref<1x32xbf16, #tpu.memory_space<vmem>>, vector<1x32xbf16>
    %c0_8 = arith.constant 0 : index
    %c0_9 = arith.constant 0 : index
    %c0_10 = arith.constant 0 : index
    %5 = vector.load %arg5[%c0_8, %c0_9, %c0_10] : memref<1x1x16xf32, #tpu.memory_space<vmem>>, vector<1x1x16xf32>
    %6 = vector.shape_cast %5 : vector<1x1x16xf32> to vector<1x16xf32>
    %cst = arith.constant 5.000000e-01 : f32
    %7 = vector.broadcast %cst : f32 to vector<1x16xf32>
    %8 = arith.cmpf ogt, %6, %7 : vector<1x16xf32>
    %9 = vector.extract_strided_slice %1 {offsets = [0, 0], sizes = [16, 8], strides = [1, 1]} : vector<16x96xbf16> to vector<16x8xbf16>
    %10 = vector.extract_strided_slice %1 {offsets = [0, 32], sizes = [16, 8], strides = [1, 1]} : vector<16x96xbf16> to vector<16x8xbf16>
    %11 = vector.extract_strided_slice %1 {offsets = [0, 64], sizes = [16, 8], strides = [1, 1]} : vector<16x96xbf16> to vector<16x8xbf16>
    %12 = vector.extract_strided_slice %3 {offsets = [0, 0], sizes = [1, 8], strides = [1, 1]} : vector<1x32xbf16> to vector<1x8xbf16>
    %13 = vector.broadcast %12 : vector<1x8xbf16> to vector<16x8xbf16>
    %14 = arith.addf %9, %13 : vector<16x8xbf16>
    %15 = vector.extract_strided_slice %4 {offsets = [0, 0], sizes = [1, 8], strides = [1, 1]} : vector<1x32xbf16> to vector<1x8xbf16>
    %16 = vector.broadcast %15 : vector<1x8xbf16> to vector<16x8xbf16>
    %17 = arith.addf %9, %16 : vector<16x8xbf16>
    %cst_11 = arith.constant dense<0.000000e+00> : vector<16x16xf32>
    %18 = tpu.matmul %14, %10, %cst_11 {dimension_numbers = #tpu.dot_dimension_numbers<[1], [1], [0], [0], [0, 0, 1, 0], [], []>} : vector<16x8xbf16>, vector<16x8xbf16>, vector<16x16xf32> -> vector<16x16xf32>
    %19 = vector.extract_strided_slice %2 {offsets = [0, 0], sizes = [128, 8], strides = [1, 1]} : vector<128x32xbf16> to vector<128x8xbf16>
    %cst_12 = arith.constant dense<0.000000e+00> : vector<16x128xf32>
    %20 = tpu.matmul %17, %19, %cst_12 {dimension_numbers = #tpu.dot_dimension_numbers<[1], [1], [0], [0], [0, 0, 1, 0], [], []>} : vector<16x8xbf16>, vector<128x8xbf16>, vector<16x128xf32> -> vector<16x128xf32>
    %21 = tpu.iota {dimensions = array<i32: 0>} : vector<16x1xi32>
    %c15_i32 = arith.constant 15 : i32
    %22 = vector.broadcast %c15_i32 : i32 to vector<16x1xi32>
    %23 = arith.subi %22, %21 : vector<16x1xi32>
    %24 = vector.extract_strided_slice %20 {offsets = [0, 1], sizes = [16, 127], strides = [1, 1]} : vector<16x128xf32> to vector<16x127xf32>
    %25 = vector.extract_strided_slice %20 {offsets = [0, 0], sizes = [16, 1], strides = [1, 1]} : vector<16x128xf32> to vector<16x1xf32>
    %26 = tpu.concatenate %24, %25 in 1 : vector<16x127xf32>, vector<16x1xf32> -> vector<16x128xf32>
    %c0_i32 = arith.constant 0 : i32
    %27 = vector.broadcast %c0_i32 : i32 to vector<16x1xi32>
    %28 = arith.shrsi %23, %27 : vector<16x1xi32>
    %c1_i32 = arith.constant 1 : i32
    %29 = vector.broadcast %c1_i32 : i32 to vector<16x1xi32>
    %30 = arith.andi %28, %29 : vector<16x1xi32>
    %c1_i32_13 = arith.constant 1 : i32
    %31 = vector.broadcast %c1_i32_13 : i32 to vector<16x1xi32>
    %32 = arith.cmpi eq, %30, %31 : vector<16x1xi32>
    %33 = vector.shape_cast %32 : vector<16x1xi1> to vector<16x1xi1>
    %34 = vector.broadcast %33 : vector<16x1xi1> to vector<16x128xi1>
    %35 = arith.select %34, %26, %20 : vector<16x128xi1>, vector<16x128xf32>
    %36 = vector.extract_strided_slice %35 {offsets = [0, 2], sizes = [16, 126], strides = [1, 1]} : vector<16x128xf32> to vector<16x126xf32>
    %37 = vector.extract_strided_slice %35 {offsets = [0, 0], sizes = [16, 2], strides = [1, 1]} : vector<16x128xf32> to vector<16x2xf32>
    %38 = tpu.concatenate %36, %37 in 1 : vector<16x126xf32>, vector<16x2xf32> -> vector<16x128xf32>
    %c1_i32_14 = arith.constant 1 : i32
    %39 = vector.broadcast %c1_i32_14 : i32 to vector<16x1xi32>
    %40 = arith.shrsi %23, %39 : vector<16x1xi32>
    %c1_i32_15 = arith.constant 1 : i32
    %41 = vector.broadcast %c1_i32_15 : i32 to vector<16x1xi32>
    %42 = arith.andi %40, %41 : vector<16x1xi32>
    %c1_i32_16 = arith.constant 1 : i32
    %43 = vector.broadcast %c1_i32_16 : i32 to vector<16x1xi32>
    %44 = arith.cmpi eq, %42, %43 : vector<16x1xi32>
    %45 = vector.shape_cast %44 : vector<16x1xi1> to vector<16x1xi1>
    %46 = vector.broadcast %45 : vector<16x1xi1> to vector<16x128xi1>
    %47 = arith.select %46, %38, %35 : vector<16x128xi1>, vector<16x128xf32>
    %48 = vector.extract_strided_slice %47 {offsets = [0, 4], sizes = [16, 124], strides = [1, 1]} : vector<16x128xf32> to vector<16x124xf32>
    %49 = vector.extract_strided_slice %47 {offsets = [0, 0], sizes = [16, 4], strides = [1, 1]} : vector<16x128xf32> to vector<16x4xf32>
    %50 = tpu.concatenate %48, %49 in 1 : vector<16x124xf32>, vector<16x4xf32> -> vector<16x128xf32>
    %c2_i32 = arith.constant 2 : i32
    %51 = vector.broadcast %c2_i32 : i32 to vector<16x1xi32>
    %52 = arith.shrsi %23, %51 : vector<16x1xi32>
    %c1_i32_17 = arith.constant 1 : i32
    %53 = vector.broadcast %c1_i32_17 : i32 to vector<16x1xi32>
    %54 = arith.andi %52, %53 : vector<16x1xi32>
    %c1_i32_18 = arith.constant 1 : i32
    %55 = vector.broadcast %c1_i32_18 : i32 to vector<16x1xi32>
    %56 = arith.cmpi eq, %54, %55 : vector<16x1xi32>
    %57 = vector.shape_cast %56 : vector<16x1xi1> to vector<16x1xi1>
    %58 = vector.broadcast %57 : vector<16x1xi1> to vector<16x128xi1>
    %59 = arith.select %58, %50, %47 : vector<16x128xi1>, vector<16x128xf32>
    %60 = vector.extract_strided_slice %59 {offsets = [0, 8], sizes = [16, 120], strides = [1, 1]} : vector<16x128xf32> to vector<16x120xf32>
    %61 = vector.extract_strided_slice %59 {offsets = [0, 0], sizes = [16, 8], strides = [1, 1]} : vector<16x128xf32> to vector<16x8xf32>
    %62 = tpu.concatenate %60, %61 in 1 : vector<16x120xf32>, vector<16x8xf32> -> vector<16x128xf32>
    %c3_i32 = arith.constant 3 : i32
    %63 = vector.broadcast %c3_i32 : i32 to vector<16x1xi32>
    %64 = arith.shrsi %23, %63 : vector<16x1xi32>
    %c1_i32_19 = arith.constant 1 : i32
    %65 = vector.broadcast %c1_i32_19 : i32 to vector<16x1xi32>
    %66 = arith.andi %64, %65 : vector<16x1xi32>
    %c1_i32_20 = arith.constant 1 : i32
    %67 = vector.broadcast %c1_i32_20 : i32 to vector<16x1xi32>
    %68 = arith.cmpi eq, %66, %67 : vector<16x1xi32>
    %69 = vector.shape_cast %68 : vector<16x1xi1> to vector<16x1xi1>
    %70 = vector.broadcast %69 : vector<16x1xi1> to vector<16x128xi1>
    %71 = arith.select %70, %62, %59 : vector<16x128xi1>, vector<16x128xf32>
    %72 = vector.extract_strided_slice %71 {offsets = [0, 0], sizes = [16, 16], strides = [1, 1]} : vector<16x128xf32> to vector<16x16xf32>
    %73 = arith.addf %18, %72 : vector<16x16xf32>
    %cst_21 = arith.constant 0.353553385 : f32
    %74 = vector.broadcast %cst_21 : f32 to vector<16x16xf32>
    %75 = arith.mulf %73, %74 : vector<16x16xf32>
    %cst_22 = arith.constant -1.000000e+30 : f32
    %76 = vector.shape_cast %8 : vector<1x16xi1> to vector<1x16xi1>
    %77 = vector.broadcast %76 : vector<1x16xi1> to vector<16x16xi1>
    %78 = vector.broadcast %cst_22 : f32 to vector<16x16xf32>
    %79 = arith.select %77, %78, %75 : vector<16x16xi1>, vector<16x16xf32>
    %cst_23 = arith.constant dense<0xFF800000> : vector<16xf32>
    %80 = vector.multi_reduction <maximumf>, %79, %cst_23 [1] : vector<16x16xf32> to vector<16xf32>
    %81 = vector.shape_cast %80 : vector<16xf32> to vector<16x1xf32>
    %82 = vector.broadcast %81 : vector<16x1xf32> to vector<16x16xf32>
    %83 = arith.subf %79, %82 : vector<16x16xf32>
    %84 = math.exp %83 : vector<16x16xf32>
    %cst_24 = arith.constant dense<0.000000e+00> : vector<16xf32>
    %85 = vector.multi_reduction <add>, %84, %cst_24 [1] : vector<16x16xf32> to vector<16xf32>
    %86 = vector.shape_cast %85 : vector<16xf32> to vector<16x1xf32>
    %87 = tpu.reciprocal %86 {approx = true} : vector<16x1xf32> -> vector<16x1xf32>
    %88 = vector.broadcast %87 : vector<16x1xf32> to vector<16x16xf32>
    %89 = arith.mulf %84, %88 : vector<16x16xf32>
    %90 = arith.truncf %89 : vector<16x16xf32> to vector<16x16xbf16>
    %cst_25 = arith.constant dense<0.000000e+00> : vector<16x8xf32>
    %91 = tpu.matmul %90, %11, %cst_25 {dimension_numbers = #tpu.dot_dimension_numbers<[1], [0], [0], [1], [0, 0, 1, 1], [], []>} : vector<16x16xbf16>, vector<16x8xbf16>, vector<16x8xf32> -> vector<16x8xf32>
    %92 = arith.truncf %91 : vector<16x8xf32> to vector<16x8xbf16>
    %c0_26 = arith.constant 0 : index
    %c0_27 = arith.constant 0 : index
    %c0_28 = arith.constant 0 : index
    %93 = vector.load %arg6[%c0_26, %c0_27, %c0_28] : memref<1x16x32xbf16, #tpu.memory_space<vmem>>, vector<1x16x8xbf16>
    %94 = vector.shape_cast %93 : vector<1x16x8xbf16> to vector<16x8xbf16>
    %95 = vector.shape_cast %92 : vector<16x8xbf16> to vector<1x16x8xbf16>
    tpu.vector_store %arg6[%c0_26, %c0_27, %c0_28], %95 {strides = array<i32>} : memref<1x16x32xbf16, #tpu.memory_space<vmem>>, vector<1x16x8xbf16>,
    %96 = vector.extract_strided_slice %1 {offsets = [0, 8], sizes = [16, 8], strides = [1, 1]} : vector<16x96xbf16> to vector<16x8xbf16>
    %97 = vector.extract_strided_slice %1 {offsets = [0, 40], sizes = [16, 8], strides = [1, 1]} : vector<16x96xbf16> to vector<16x8xbf16>
    %98 = vector.extract_strided_slice %1 {offsets = [0, 72], sizes = [16, 8], strides = [1, 1]} : vector<16x96xbf16> to vector<16x8xbf16>
    %99 = vector.extract_strided_slice %3 {offsets = [0, 8], sizes = [1, 8], strides = [1, 1]} : vector<1x32xbf16> to vector<1x8xbf16>
    %100 = vector.broadcast %99 : vector<1x8xbf16> to vector<16x8xbf16>
    %101 = arith.addf %96, %100 : vector<16x8xbf16>
    %102 = vector.extract_strided_slice %4 {offsets = [0, 8], sizes = [1, 8], strides = [1, 1]} : vector<1x32xbf16> to vector<1x8xbf16>
    %103 = vector.broadcast %102 : vector<1x8xbf16> to vector<16x8xbf16>
    %104 = arith.addf %96, %103 : vector<16x8xbf16>
    %cst_29 = arith.constant dense<0.000000e+00> : vector<16x16xf32>
    %105 = tpu.matmul %101, %97, %cst_29 {dimension_numbers = #tpu.dot_dimension_numbers<[1], [1], [0], [0], [0, 0, 1, 0], [], []>} : vector<16x8xbf16>, vector<16x8xbf16>, vector<16x16xf32> -> vector<16x16xf32>
    %106 = vector.extract_strided_slice %2 {offsets = [0, 8], sizes = [128, 8], strides = [1, 1]} : vector<128x32xbf16> to vector<128x8xbf16>
    %cst_30 = arith.constant dense<0.000000e+00> : vector<16x128xf32>
    %107 = tpu.matmul %104, %106, %cst_30 {dimension_numbers = #tpu.dot_dimension_numbers<[1], [1], [0], [0], [0, 0, 1, 0], [], []>} : vector<16x8xbf16>, vector<128x8xbf16>, vector<16x128xf32> -> vector<16x128xf32>
    %108 = tpu.iota {dimensions = array<i32: 0>} : vector<16x1xi32>
    %c15_i32_31 = arith.constant 15 : i32
    %109 = vector.broadcast %c15_i32_31 : i32 to vector<16x1xi32>
    %110 = arith.subi %109, %108 : vector<16x1xi32>
    %111 = vector.extract_strided_slice %107 {offsets = [0, 1], sizes = [16, 127], strides = [1, 1]} : vector<16x128xf32> to vector<16x127xf32>
    %112 = vector.extract_strided_slice %107 {offsets = [0, 0], sizes = [16, 1], strides = [1, 1]} : vector<16x128xf32> to vector<16x1xf32>
    %113 = tpu.concatenate %111, %112 in 1 : vector<16x127xf32>, vector<16x1xf32> -> vector<16x128xf32>
    %c0_i32_32 = arith.constant 0 : i32
    %114 = vector.broadcast %c0_i32_32 : i32 to vector<16x1xi32>
    %115 = arith.shrsi %110, %114 : vector<16x1xi32>
    %c1_i32_33 = arith.constant 1 : i32
    %116 = vector.broadcast %c1_i32_33 : i32 to vector<16x1xi32>
    %117 = arith.andi %115, %116 : vector<16x1xi32>
    %c1_i32_34 = arith.constant 1 : i32
    %118 = vector.broadcast %c1_i32_34 : i32 to vector<16x1xi32>
    %119 = arith.cmpi eq, %117, %118 : vector<16x1xi32>
    %120 = vector.shape_cast %119 : vector<16x1xi1> to vector<16x1xi1>
    %121 = vector.broadcast %120 : vector<16x1xi1> to vector<16x128xi1>
    %122 = arith.select %121, %113, %107 : vector<16x128xi1>, vector<16x128xf32>
    %123 = vector.extract_strided_slice %122 {offsets = [0, 2], sizes = [16, 126], strides = [1, 1]} : vector<16x128xf32> to vector<16x126xf32>
    %124 = vector.extract_strided_slice %122 {offsets = [0, 0], sizes = [16, 2], strides = [1, 1]} : vector<16x128xf32> to vector<16x2xf32>
    %125 = tpu.concatenate %123, %124 in 1 : vector<16x126xf32>, vector<16x2xf32> -> vector<16x128xf32>
    %c1_i32_35 = arith.constant 1 : i32
    %126 = vector.broadcast %c1_i32_35 : i32 to vector<16x1xi32>
    %127 = arith.shrsi %110, %126 : vector<16x1xi32>
    %c1_i32_36 = arith.constant 1 : i32
    %128 = vector.broadcast %c1_i32_36 : i32 to vector<16x1xi32>
    %129 = arith.andi %127, %128 : vector<16x1xi32>
    %c1_i32_37 = arith.constant 1 : i32
    %130 = vector.broadcast %c1_i32_37 : i32 to vector<16x1xi32>
    %131 = arith.cmpi eq, %129, %130 : vector<16x1xi32>
    %132 = vector.shape_cast %131 : vector<16x1xi1> to vector<16x1xi1>
    %133 = vector.broadcast %132 : vector<16x1xi1> to vector<16x128xi1>
    %134 = arith.select %133, %125, %122 : vector<16x128xi1>, vector<16x128xf32>
    %135 = vector.extract_strided_slice %134 {offsets = [0, 4], sizes = [16, 124], strides = [1, 1]} : vector<16x128xf32> to vector<16x124xf32>
    %136 = vector.extract_strided_slice %134 {offsets = [0, 0], sizes = [16, 4], strides = [1, 1]} : vector<16x128xf32> to vector<16x4xf32>
    %137 = tpu.concatenate %135, %136 in 1 : vector<16x124xf32>, vector<16x4xf32> -> vector<16x128xf32>
    %c2_i32_38 = arith.constant 2 : i32
    %138 = vector.broadcast %c2_i32_38 : i32 to vector<16x1xi32>
    %139 = arith.shrsi %110, %138 : vector<16x1xi32>
    %c1_i32_39 = arith.constant 1 : i32
    %140 = vector.broadcast %c1_i32_39 : i32 to vector<16x1xi32>
    %141 = arith.andi %139, %140 : vector<16x1xi32>
    %c1_i32_40 = arith.constant 1 : i32
    %142 = vector.broadcast %c1_i32_40 : i32 to vector<16x1xi32>
    %143 = arith.cmpi eq, %141, %142 : vector<16x1xi32>
    %144 = vector.shape_cast %143 : vector<16x1xi1> to vector<16x1xi1>
    %145 = vector.broadcast %144 : vector<16x1xi1> to vector<16x128xi1>
    %146 = arith.select %145, %137, %134 : vector<16x128xi1>, vector<16x128xf32>
    %147 = vector.extract_strided_slice %146 {offsets = [0, 8], sizes = [16, 120], strides = [1, 1]} : vector<16x128xf32> to vector<16x120xf32>
    %148 = vector.extract_strided_slice %146 {offsets = [0, 0], sizes = [16, 8], strides = [1, 1]} : vector<16x128xf32> to vector<16x8xf32>
    %149 = tpu.concatenate %147, %148 in 1 : vector<16x120xf32>, vector<16x8xf32> -> vector<16x128xf32>
    %c3_i32_41 = arith.constant 3 : i32
    %150 = vector.broadcast %c3_i32_41 : i32 to vector<16x1xi32>
    %151 = arith.shrsi %110, %150 : vector<16x1xi32>
    %c1_i32_42 = arith.constant 1 : i32
    %152 = vector.broadcast %c1_i32_42 : i32 to vector<16x1xi32>
    %153 = arith.andi %151, %152 : vector<16x1xi32>
    %c1_i32_43 = arith.constant 1 : i32
    %154 = vector.broadcast %c1_i32_43 : i32 to vector<16x1xi32>
    %155 = arith.cmpi eq, %153, %154 : vector<16x1xi32>
    %156 = vector.shape_cast %155 : vector<16x1xi1> to vector<16x1xi1>
    %157 = vector.broadcast %156 : vector<16x1xi1> to vector<16x128xi1>
    %158 = arith.select %157, %149, %146 : vector<16x128xi1>, vector<16x128xf32>
    %159 = vector.extract_strided_slice %158 {offsets = [0, 0], sizes = [16, 16], strides = [1, 1]} : vector<16x128xf32> to vector<16x16xf32>
    %160 = arith.addf %105, %159 : vector<16x16xf32>
    %cst_44 = arith.constant 0.353553385 : f32
    %161 = vector.broadcast %cst_44 : f32 to vector<16x16xf32>
    %162 = arith.mulf %160, %161 : vector<16x16xf32>
    %cst_45 = arith.constant -1.000000e+30 : f32
    %163 = vector.shape_cast %8 : vector<1x16xi1> to vector<1x16xi1>
    %164 = vector.broadcast %163 : vector<1x16xi1> to vector<16x16xi1>
    %165 = vector.broadcast %cst_45 : f32 to vector<16x16xf32>
    %166 = arith.select %164, %165, %162 : vector<16x16xi1>, vector<16x16xf32>
    %cst_46 = arith.constant dense<0xFF800000> : vector<16xf32>
    %167 = vector.multi_reduction <maximumf>, %166, %cst_46 [1] : vector<16x16xf32> to vector<16xf32>
    %168 = vector.shape_cast %167 : vector<16xf32> to vector<16x1xf32>
    %169 = vector.broadcast %168 : vector<16x1xf32> to vector<16x16xf32>
    %170 = arith.subf %166, %169 : vector<16x16xf32>
    %171 = math.exp %170 : vector<16x16xf32>
    %cst_47 = arith.constant dense<0.000000e+00> : vector<16xf32>
    %172 = vector.multi_reduction <add>, %171, %cst_47 [1] : vector<16x16xf32> to vector<16xf32>
    %173 = vector.shape_cast %172 : vector<16xf32> to vector<16x1xf32>
    %174 = tpu.reciprocal %173 {approx = true} : vector<16x1xf32> -> vector<16x1xf32>
    %175 = vector.broadcast %174 : vector<16x1xf32> to vector<16x16xf32>
    %176 = arith.mulf %171, %175 : vector<16x16xf32>
    %177 = arith.truncf %176 : vector<16x16xf32> to vector<16x16xbf16>
    %cst_48 = arith.constant dense<0.000000e+00> : vector<16x8xf32>
    %178 = tpu.matmul %177, %98, %cst_48 {dimension_numbers = #tpu.dot_dimension_numbers<[1], [0], [0], [1], [0, 0, 1, 1], [], []>} : vector<16x16xbf16>, vector<16x8xbf16>, vector<16x8xf32> -> vector<16x8xf32>
    %179 = arith.truncf %178 : vector<16x8xf32> to vector<16x8xbf16>
    %c0_49 = arith.constant 0 : index
    %c0_50 = arith.constant 0 : index
    %c8 = arith.constant 8 : index
    %180 = vector.load %arg6[%c0_49, %c0_50, %c8] : memref<1x16x32xbf16, #tpu.memory_space<vmem>>, vector<1x16x8xbf16>
    %181 = vector.shape_cast %180 : vector<1x16x8xbf16> to vector<16x8xbf16>
    %182 = vector.shape_cast %179 : vector<16x8xbf16> to vector<1x16x8xbf16>
    tpu.vector_store %arg6[%c0_49, %c0_50, %c8], %182 {strides = array<i32>} : memref<1x16x32xbf16, #tpu.memory_space<vmem>>, vector<1x16x8xbf16>,
    %183 = vector.extract_strided_slice %1 {offsets = [0, 16], sizes = [16, 8], strides = [1, 1]} : vector<16x96xbf16> to vector<16x8xbf16>
    %184 = vector.extract_strided_slice %1 {offsets = [0, 48], sizes = [16, 8], strides = [1, 1]} : vector<16x96xbf16> to vector<16x8xbf16>
    %185 = vector.extract_strided_slice %1 {offsets = [0, 80], sizes = [16, 8], strides = [1, 1]} : vector<16x96xbf16> to vector<16x8xbf16>
    %186 = vector.extract_strided_slice %3 {offsets = [0, 16], sizes = [1, 8], strides = [1, 1]} : vector<1x32xbf16> to vector<1x8xbf16>
    %187 = vector.broadcast %186 : vector<1x8xbf16> to vector<16x8xbf16>
    %188 = arith.addf %183, %187 : vector<16x8xbf16>
    %189 = vector.extract_strided_slice %4 {offsets = [0, 16], sizes = [1, 8], strides = [1, 1]} : vector<1x32xbf16> to vector<1x8xbf16>
    %190 = vector.broadcast %189 : vector<1x8xbf16> to vector<16x8xbf16>
    %191 = arith.addf %183, %190 : vector<16x8xbf16>
    %cst_51 = arith.constant dense<0.000000e+00> : vector<16x16xf32>
    %192 = tpu.matmul %188, %184, %cst_51 {dimension_numbers = #tpu.dot_dimension_numbers<[1], [1], [0], [0], [0, 0, 1, 0], [], []>} : vector<16x8xbf16>, vector<16x8xbf16>, vector<16x16xf32> -> vector<16x16xf32>
    %193 = vector.extract_strided_slice %2 {offsets = [0, 16], sizes = [128, 8], strides = [1, 1]} : vector<128x32xbf16> to vector<128x8xbf16>
    %cst_52 = arith.constant dense<0.000000e+00> : vector<16x128xf32>
    %194 = tpu.matmul %191, %193, %cst_52 {dimension_numbers = #tpu.dot_dimension_numbers<[1], [1], [0], [0], [0, 0, 1, 0], [], []>} : vector<16x8xbf16>, vector<128x8xbf16>, vector<16x128xf32> -> vector<16x128xf32>
    %195 = tpu.iota {dimensions = array<i32: 0>} : vector<16x1xi32>
    %c15_i32_53 = arith.constant 15 : i32
    %196 = vector.broadcast %c15_i32_53 : i32 to vector<16x1xi32>
    %197 = arith.subi %196, %195 : vector<16x1xi32>
    %198 = vector.extract_strided_slice %194 {offsets = [0, 1], sizes = [16, 127], strides = [1, 1]} : vector<16x128xf32> to vector<16x127xf32>
    %199 = vector.extract_strided_slice %194 {offsets = [0, 0], sizes = [16, 1], strides = [1, 1]} : vector<16x128xf32> to vector<16x1xf32>
    %200 = tpu.concatenate %198, %199 in 1 : vector<16x127xf32>, vector<16x1xf32> -> vector<16x128xf32>
    %c0_i32_54 = arith.constant 0 : i32
    %201 = vector.broadcast %c0_i32_54 : i32 to vector<16x1xi32>
    %202 = arith.shrsi %197, %201 : vector<16x1xi32>
    %c1_i32_55 = arith.constant 1 : i32
    %203 = vector.broadcast %c1_i32_55 : i32 to vector<16x1xi32>
    %204 = arith.andi %202, %203 : vector<16x1xi32>
    %c1_i32_56 = arith.constant 1 : i32
    %205 = vector.broadcast %c1_i32_56 : i32 to vector<16x1xi32>
    %206 = arith.cmpi eq, %204, %205 : vector<16x1xi32>
    %207 = vector.shape_cast %206 : vector<16x1xi1> to vector<16x1xi1>
    %208 = vector.broadcast %207 : vector<16x1xi1> to vector<16x128xi1>
    %209 = arith.select %208, %200, %194 : vector<16x128xi1>, vector<16x128xf32>
    %210 = vector.extract_strided_slice %209 {offsets = [0, 2], sizes = [16, 126], strides = [1, 1]} : vector<16x128xf32> to vector<16x126xf32>
    %211 = vector.extract_strided_slice %209 {offsets = [0, 0], sizes = [16, 2], strides = [1, 1]} : vector<16x128xf32> to vector<16x2xf32>
    %212 = tpu.concatenate %210, %211 in 1 : vector<16x126xf32>, vector<16x2xf32> -> vector<16x128xf32>
    %c1_i32_57 = arith.constant 1 : i32
    %213 = vector.broadcast %c1_i32_57 : i32 to vector<16x1xi32>
    %214 = arith.shrsi %197, %213 : vector<16x1xi32>
    %c1_i32_58 = arith.constant 1 : i32
    %215 = vector.broadcast %c1_i32_58 : i32 to vector<16x1xi32>
    %216 = arith.andi %214, %215 : vector<16x1xi32>
    %c1_i32_59 = arith.constant 1 : i32
    %217 = vector.broadcast %c1_i32_59 : i32 to vector<16x1xi32>
    %218 = arith.cmpi eq, %216, %217 : vector<16x1xi32>
    %219 = vector.shape_cast %218 : vector<16x1xi1> to vector<16x1xi1>
    %220 = vector.broadcast %219 : vector<16x1xi1> to vector<16x128xi1>
    %221 = arith.select %220, %212, %209 : vector<16x128xi1>, vector<16x128xf32>
    %222 = vector.extract_strided_slice %221 {offsets = [0, 4], sizes = [16, 124], strides = [1, 1]} : vector<16x128xf32> to vector<16x124xf32>
    %223 = vector.extract_strided_slice %221 {offsets = [0, 0], sizes = [16, 4], strides = [1, 1]} : vector<16x128xf32> to vector<16x4xf32>
    %224 = tpu.concatenate %222, %223 in 1 : vector<16x124xf32>, vector<16x4xf32> -> vector<16x128xf32>
    %c2_i32_60 = arith.constant 2 : i32
    %225 = vector.broadcast %c2_i32_60 : i32 to vector<16x1xi32>
    %226 = arith.shrsi %197, %225 : vector<16x1xi32>
    %c1_i32_61 = arith.constant 1 : i32
    %227 = vector.broadcast %c1_i32_61 : i32 to vector<16x1xi32>
    %228 = arith.andi %226, %227 : vector<16x1xi32>
    %c1_i32_62 = arith.constant 1 : i32
    %229 = vector.broadcast %c1_i32_62 : i32 to vector<16x1xi32>
    %230 = arith.cmpi eq, %228, %229 : vector<16x1xi32>
    %231 = vector.shape_cast %230 : vector<16x1xi1> to vector<16x1xi1>
    %232 = vector.broadcast %231 : vector<16x1xi1> to vector<16x128xi1>
    %233 = arith.select %232, %224, %221 : vector<16x128xi1>, vector<16x128xf32>
    %234 = vector.extract_strided_slice %233 {offsets = [0, 8], sizes = [16, 120], strides = [1, 1]} : vector<16x128xf32> to vector<16x120xf32>
    %235 = vector.extract_strided_slice %233 {offsets = [0, 0], sizes = [16, 8], strides = [1, 1]} : vector<16x128xf32> to vector<16x8xf32>
    %236 = tpu.concatenate %234, %235 in 1 : vector<16x120xf32>, vector<16x8xf32> -> vector<16x128xf32>
    %c3_i32_63 = arith.constant 3 : i32
    %237 = vector.broadcast %c3_i32_63 : i32 to vector<16x1xi32>
    %238 = arith.shrsi %197, %237 : vector<16x1xi32>
    %c1_i32_64 = arith.constant 1 : i32
    %239 = vector.broadcast %c1_i32_64 : i32 to vector<16x1xi32>
    %240 = arith.andi %238, %239 : vector<16x1xi32>
    %c1_i32_65 = arith.constant 1 : i32
    %241 = vector.broadcast %c1_i32_65 : i32 to vector<16x1xi32>
    %242 = arith.cmpi eq, %240, %241 : vector<16x1xi32>
    %243 = vector.shape_cast %242 : vector<16x1xi1> to vector<16x1xi1>
    %244 = vector.broadcast %243 : vector<16x1xi1> to vector<16x128xi1>
    %245 = arith.select %244, %236, %233 : vector<16x128xi1>, vector<16x128xf32>
    %246 = vector.extract_strided_slice %245 {offsets = [0, 0], sizes = [16, 16], strides = [1, 1]} : vector<16x128xf32> to vector<16x16xf32>
    %247 = arith.addf %192, %246 : vector<16x16xf32>
    %cst_66 = arith.constant 0.353553385 : f32
    %248 = vector.broadcast %cst_66 : f32 to vector<16x16xf32>
    %249 = arith.mulf %247, %248 : vector<16x16xf32>
    %cst_67 = arith.constant -1.000000e+30 : f32
    %250 = vector.shape_cast %8 : vector<1x16xi1> to vector<1x16xi1>
    %251 = vector.broadcast %250 : vector<1x16xi1> to vector<16x16xi1>
    %252 = vector.broadcast %cst_67 : f32 to vector<16x16xf32>
    %253 = arith.select %251, %252, %249 : vector<16x16xi1>, vector<16x16xf32>
    %cst_68 = arith.constant dense<0xFF800000> : vector<16xf32>
    %254 = vector.multi_reduction <maximumf>, %253, %cst_68 [1] : vector<16x16xf32> to vector<16xf32>
    %255 = vector.shape_cast %254 : vector<16xf32> to vector<16x1xf32>
    %256 = vector.broadcast %255 : vector<16x1xf32> to vector<16x16xf32>
    %257 = arith.subf %253, %256 : vector<16x16xf32>
    %258 = math.exp %257 : vector<16x16xf32>
    %cst_69 = arith.constant dense<0.000000e+00> : vector<16xf32>
    %259 = vector.multi_reduction <add>, %258, %cst_69 [1] : vector<16x16xf32> to vector<16xf32>
    %260 = vector.shape_cast %259 : vector<16xf32> to vector<16x1xf32>
    %261 = tpu.reciprocal %260 {approx = true} : vector<16x1xf32> -> vector<16x1xf32>
    %262 = vector.broadcast %261 : vector<16x1xf32> to vector<16x16xf32>
    %263 = arith.mulf %258, %262 : vector<16x16xf32>
    %264 = arith.truncf %263 : vector<16x16xf32> to vector<16x16xbf16>
    %cst_70 = arith.constant dense<0.000000e+00> : vector<16x8xf32>
    %265 = tpu.matmul %264, %185, %cst_70 {dimension_numbers = #tpu.dot_dimension_numbers<[1], [0], [0], [1], [0, 0, 1, 1], [], []>} : vector<16x16xbf16>, vector<16x8xbf16>, vector<16x8xf32> -> vector<16x8xf32>
    %266 = arith.truncf %265 : vector<16x8xf32> to vector<16x8xbf16>
    %c0_71 = arith.constant 0 : index
    %c0_72 = arith.constant 0 : index
    %c16 = arith.constant 16 : index
    %267 = vector.load %arg6[%c0_71, %c0_72, %c16] : memref<1x16x32xbf16, #tpu.memory_space<vmem>>, vector<1x16x8xbf16>
    %268 = vector.shape_cast %267 : vector<1x16x8xbf16> to vector<16x8xbf16>
    %269 = vector.shape_cast %266 : vector<16x8xbf16> to vector<1x16x8xbf16>
    tpu.vector_store %arg6[%c0_71, %c0_72, %c16], %269 {strides = array<i32>} : memref<1x16x32xbf16, #tpu.memory_space<vmem>>, vector<1x16x8xbf16>,
    %270 = vector.extract_strided_slice %1 {offsets = [0, 24], sizes = [16, 8], strides = [1, 1]} : vector<16x96xbf16> to vector<16x8xbf16>
    %271 = vector.extract_strided_slice %1 {offsets = [0, 56], sizes = [16, 8], strides = [1, 1]} : vector<16x96xbf16> to vector<16x8xbf16>
    %272 = vector.extract_strided_slice %1 {offsets = [0, 88], sizes = [16, 8], strides = [1, 1]} : vector<16x96xbf16> to vector<16x8xbf16>
    %273 = vector.extract_strided_slice %3 {offsets = [0, 24], sizes = [1, 8], strides = [1, 1]} : vector<1x32xbf16> to vector<1x8xbf16>
    %274 = vector.broadcast %273 : vector<1x8xbf16> to vector<16x8xbf16>
    %275 = arith.addf %270, %274 : vector<16x8xbf16>
    %276 = vector.extract_strided_slice %4 {offsets = [0, 24], sizes = [1, 8], strides = [1, 1]} : vector<1x32xbf16> to vector<1x8xbf16>
    %277 = vector.broadcast %276 : vector<1x8xbf16> to vector<16x8xbf16>
    %278 = arith.addf %270, %277 : vector<16x8xbf16>
    %cst_73 = arith.constant dense<0.000000e+00> : vector<16x16xf32>
    %279 = tpu.matmul %275, %271, %cst_73 {dimension_numbers = #tpu.dot_dimension_numbers<[1], [1], [0], [0], [0, 0, 1, 0], [], []>} : vector<16x8xbf16>, vector<16x8xbf16>, vector<16x16xf32> -> vector<16x16xf32>
    %280 = vector.extract_strided_slice %2 {offsets = [0, 24], sizes = [128, 8], strides = [1, 1]} : vector<128x32xbf16> to vector<128x8xbf16>
    %cst_74 = arith.constant dense<0.000000e+00> : vector<16x128xf32>
    %281 = tpu.matmul %278, %280, %cst_74 {dimension_numbers = #tpu.dot_dimension_numbers<[1], [1], [0], [0], [0, 0, 1, 0], [], []>} : vector<16x8xbf16>, vector<128x8xbf16>, vector<16x128xf32> -> vector<16x128xf32>
    %282 = tpu.iota {dimensions = array<i32: 0>} : vector<16x1xi32>
    %c15_i32_75 = arith.constant 15 : i32
    %283 = vector.broadcast %c15_i32_75 : i32 to vector<16x1xi32>
    %284 = arith.subi %283, %282 : vector<16x1xi32>
    %285 = vector.extract_strided_slice %281 {offsets = [0, 1], sizes = [16, 127], strides = [1, 1]} : vector<16x128xf32> to vector<16x127xf32>
    %286 = vector.extract_strided_slice %281 {offsets = [0, 0], sizes = [16, 1], strides = [1, 1]} : vector<16x128xf32> to vector<16x1xf32>
    %287 = tpu.concatenate %285, %286 in 1 : vector<16x127xf32>, vector<16x1xf32> -> vector<16x128xf32>
    %c0_i32_76 = arith.constant 0 : i32
    %288 = vector.broadcast %c0_i32_76 : i32 to vector<16x1xi32>
    %289 = arith.shrsi %284, %288 : vector<16x1xi32>
    %c1_i32_77 = arith.constant 1 : i32
    %290 = vector.broadcast %c1_i32_77 : i32 to vector<16x1xi32>
    %291 = arith.andi %289, %290 : vector<16x1xi32>
    %c1_i32_78 = arith.constant 1 : i32
    %292 = vector.broadcast %c1_i32_78 : i32 to vector<16x1xi32>
    %293 = arith.cmpi eq, %291, %292 : vector<16x1xi32>
    %294 = vector.shape_cast %293 : vector<16x1xi1> to vector<16x1xi1>
    %295 = vector.broadcast %294 : vector<16x1xi1> to vector<16x128xi1>
    %296 = arith.select %295, %287, %281 : vector<16x128xi1>, vector<16x128xf32>
    %297 = vector.extract_strided_slice %296 {offsets = [0, 2], sizes = [16, 126], strides = [1, 1]} : vector<16x128xf32> to vector<16x126xf32>
    %298 = vector.extract_strided_slice %296 {offsets = [0, 0], sizes = [16, 2], strides = [1, 1]} : vector<16x128xf32> to vector<16x2xf32>
    %299 = tpu.concatenate %297, %298 in 1 : vector<16x126xf32>, vector<16x2xf32> -> vector<16x128xf32>
    %c1_i32_79 = arith.constant 1 : i32
    %300 = vector.broadcast %c1_i32_79 : i32 to vector<16x1xi32>
    %301 = arith.shrsi %284, %300 : vector<16x1xi32>
    %c1_i32_80 = arith.constant 1 : i32
    %302 = vector.broadcast %c1_i32_80 : i32 to vector<16x1xi32>
    %303 = arith.andi %301, %302 : vector<16x1xi32>
    %c1_i32_81 = arith.constant 1 : i32
    %304 = vector.broadcast %c1_i32_81 : i32 to vector<16x1xi32>
    %305 = arith.cmpi eq, %303, %304 : vector<16x1xi32>
    %306 = vector.shape_cast %305 : vector<16x1xi1> to vector<16x1xi1>
    %307 = vector.broadcast %306 : vector<16x1xi1> to vector<16x128xi1>
    %308 = arith.select %307, %299, %296 : vector<16x128xi1>, vector<16x128xf32>
    %309 = vector.extract_strided_slice %308 {offsets = [0, 4], sizes = [16, 124], strides = [1, 1]} : vector<16x128xf32> to vector<16x124xf32>
    %310 = vector.extract_strided_slice %308 {offsets = [0, 0], sizes = [16, 4], strides = [1, 1]} : vector<16x128xf32> to vector<16x4xf32>
    %311 = tpu.concatenate %309, %310 in 1 : vector<16x124xf32>, vector<16x4xf32> -> vector<16x128xf32>
    %c2_i32_82 = arith.constant 2 : i32
    %312 = vector.broadcast %c2_i32_82 : i32 to vector<16x1xi32>
    %313 = arith.shrsi %284, %312 : vector<16x1xi32>
    %c1_i32_83 = arith.constant 1 : i32
    %314 = vector.broadcast %c1_i32_83 : i32 to vector<16x1xi32>
    %315 = arith.andi %313, %314 : vector<16x1xi32>
    %c1_i32_84 = arith.constant 1 : i32
    %316 = vector.broadcast %c1_i32_84 : i32 to vector<16x1xi32>
    %317 = arith.cmpi eq, %315, %316 : vector<16x1xi32>
    %318 = vector.shape_cast %317 : vector<16x1xi1> to vector<16x1xi1>
    %319 = vector.broadcast %318 : vector<16x1xi1> to vector<16x128xi1>
    %320 = arith.select %319, %311, %308 : vector<16x128xi1>, vector<16x128xf32>
    %321 = vector.extract_strided_slice %320 {offsets = [0, 8], sizes = [16, 120], strides = [1, 1]} : vector<16x128xf32> to vector<16x120xf32>
    %322 = vector.extract_strided_slice %320 {offsets = [0, 0], sizes = [16, 8], strides = [1, 1]} : vector<16x128xf32> to vector<16x8xf32>
    %323 = tpu.concatenate %321, %322 in 1 : vector<16x120xf32>, vector<16x8xf32> -> vector<16x128xf32>
    %c3_i32_85 = arith.constant 3 : i32
    %324 = vector.broadcast %c3_i32_85 : i32 to vector<16x1xi32>
    %325 = arith.shrsi %284, %324 : vector<16x1xi32>
    %c1_i32_86 = arith.constant 1 : i32
    %326 = vector.broadcast %c1_i32_86 : i32 to vector<16x1xi32>
    %327 = arith.andi %325, %326 : vector<16x1xi32>
    %c1_i32_87 = arith.constant 1 : i32
    %328 = vector.broadcast %c1_i32_87 : i32 to vector<16x1xi32>
    %329 = arith.cmpi eq, %327, %328 : vector<16x1xi32>
    %330 = vector.shape_cast %329 : vector<16x1xi1> to vector<16x1xi1>
    %331 = vector.broadcast %330 : vector<16x1xi1> to vector<16x128xi1>
    %332 = arith.select %331, %323, %320 : vector<16x128xi1>, vector<16x128xf32>
    %333 = vector.extract_strided_slice %332 {offsets = [0, 0], sizes = [16, 16], strides = [1, 1]} : vector<16x128xf32> to vector<16x16xf32>
    %334 = arith.addf %279, %333 : vector<16x16xf32>
    %cst_88 = arith.constant 0.353553385 : f32
    %335 = vector.broadcast %cst_88 : f32 to vector<16x16xf32>
    %336 = arith.mulf %334, %335 : vector<16x16xf32>
    %cst_89 = arith.constant -1.000000e+30 : f32
    %337 = vector.shape_cast %8 : vector<1x16xi1> to vector<1x16xi1>
    %338 = vector.broadcast %337 : vector<1x16xi1> to vector<16x16xi1>
    %339 = vector.broadcast %cst_89 : f32 to vector<16x16xf32>
    %340 = arith.select %338, %339, %336 : vector<16x16xi1>, vector<16x16xf32>
    %cst_90 = arith.constant dense<0xFF800000> : vector<16xf32>
    %341 = vector.multi_reduction <maximumf>, %340, %cst_90 [1] : vector<16x16xf32> to vector<16xf32>
    %342 = vector.shape_cast %341 : vector<16xf32> to vector<16x1xf32>
    %343 = vector.broadcast %342 : vector<16x1xf32> to vector<16x16xf32>
    %344 = arith.subf %340, %343 : vector<16x16xf32>
    %345 = math.exp %344 : vector<16x16xf32>
    %cst_91 = arith.constant dense<0.000000e+00> : vector<16xf32>
    %346 = vector.multi_reduction <add>, %345, %cst_91 [1] : vector<16x16xf32> to vector<16xf32>
    %347 = vector.shape_cast %346 : vector<16xf32> to vector<16x1xf32>
    %348 = tpu.reciprocal %347 {approx = true} : vector<16x1xf32> -> vector<16x1xf32>
    %349 = vector.broadcast %348 : vector<16x1xf32> to vector<16x16xf32>
    %350 = arith.mulf %345, %349 : vector<16x16xf32>
    %351 = arith.truncf %350 : vector<16x16xf32> to vector<16x16xbf16>
    %cst_92 = arith.constant dense<0.000000e+00> : vector<16x8xf32>
    %352 = tpu.matmul %351, %272, %cst_92 {dimension_numbers = #tpu.dot_dimension_numbers<[1], [0], [0], [1], [0, 0, 1, 1], [], []>} : vector<16x16xbf16>, vector<16x8xbf16>, vector<16x8xf32> -> vector<16x8xf32>
    %353 = arith.truncf %352 : vector<16x8xf32> to vector<16x8xbf16>
    %c0_93 = arith.constant 0 : index
    %c0_94 = arith.constant 0 : index
    %c24 = arith.constant 24 : index
    %354 = vector.load %arg6[%c0_93, %c0_94, %c24] : memref<1x16x32xbf16, #tpu.memory_space<vmem>>, vector<1x16x8xbf16>
    %355 = vector.shape_cast %354 : vector<1x16x8xbf16> to vector<16x8xbf16>
    %356 = vector.shape_cast %353 : vector<16x8xbf16> to vector<1x16x8xbf16>
    tpu.vector_store %arg6[%c0_93, %c0_94, %c24], %356 {strides = array<i32>} : memref<1x16x32xbf16, #tpu.memory_space<vmem>>, vector<1x16x8xbf16>,
    return
  }
  func.func @transform_0(%arg0: i32) -> (i32, i32, i32) {
    %c0_i32 = arith.constant 0 : i32
    %c0_i32_0 = arith.constant 0 : i32
    %c0_i32_1 = arith.constant 0 : i32
    return %arg0, %c0_i32, %c0_i32_0 : i32, i32, i32
  }
  func.func @transform_1(%arg0: i32) -> (i32, i32) {
    %c0_i32 = arith.constant 0 : i32
    %c0_i32_0 = arith.constant 0 : i32
    %c0_i32_1 = arith.constant 0 : i32
    return %c0_i32, %c0_i32_0 : i32, i32
  }
  func.func @transform_2(%arg0: i32) -> (i32, i32) {
    %c0_i32 = arith.constant 0 : i32
    %c0_i32_0 = arith.constant 0 : i32
    %c0_i32_1 = arith.constant 0 : i32
    return %c0_i32, %c0_i32_0 : i32, i32
  }
  func.func @transform_3(%arg0: i32) -> (i32, i32) {
    %c0_i32 = arith.constant 0 : i32
    %c0_i32_0 = arith.constant 0 : i32
    %c0_i32_1 = arith.constant 0 : i32
    return %c0_i32, %c0_i32_0 : i32, i32
  }
  func.func @transform_4(%arg0: i32) -> (i32, i32, i32) {
    %c0_i32 = arith.constant 0 : i32
    %c0_i32_0 = arith.constant 0 : i32
    %c0_i32_1 = arith.constant 0 : i32
    return %arg0, %c0_i32, %c0_i32_0 : i32, i32, i32
  }
  func.func @transform_5(%arg0: i32) -> (i32, i32, i32) {
    %c0_i32 = arith.constant 0 : i32
    %c0_i32_0 = arith.constant 0 : i32
    %c0_i32_1 = arith.constant 0 : i32
    return %arg0, %c0_i32, %c0_i32_0 : i32, i32, i32
  }
}

</mosaic_0001>

<bundles_post_ra>
// kernel: tpu_custom_call.1
= control target key start
LH: loop header
LB: loop body
LE: loop exit
PB: predicated region body
PF: predicated region fallthrough
CT: control target
= control target key end

     0   :  { %6 = vsyncpa [#allocation3], 0  ;;  %s127_s0 = inlined_call_operand.hbm [shape: f32[8,128], index: 0, kind: input, shape index: {}]   ;;  %s128_s1 = inlined_call_operand.hbm [shape: f32[8,8], index: 1, kind: output, shape index: {}]  }
   0x1   :  { %7 = vsyncpa [#allocation4], 0  ;;  %s13_s8 = sshll.u32 %s127_s0, 4  ;;  %s107_s9 = smov [#allocation2]   ;;  %s14_s8 = int_to_ptr.hbm [resolvable:$true] %s13_s8 }
   0x2   :  { %s15_s10 = sshll.u32 %s107_s9, 4  ;;  %s16_s10 = int_to_ptr.vmem [resolvable:$true] %s15_s10 }
   0x3   :  { %18 = dma.hbm_to_vmem [thread:$0]  %s14_s8, 128, %s16_s10, [#allocation3]  }
   0x4   :  { %103 = dma.done.wait [#allocation3], 128  }
   0x5   :  { %104 = vsyncadd [#allocation3], 4294967168  ;;  %v23_v0 = vld [vmem:[#allocation2] sm:$0xff]  ;;  %s108_s11 = smov 257   ;;  %s109_s12 = smov 120   ;;  %vm32_vm0 = vcmask 64512  }
   0x6   :  { %26 = vrot.lane.b32.xlu0 %v23_v0, %s108_s11  ;;  %s110_s13 = smov [#allocation5]   ;;  %s41_s17 = sshll.u32 %s128_s1, 4  ;;  %s42_s17 = int_to_ptr.hbm [resolvable:$true] %s41_s17 }
   0x7   :  { %s39_s14 = sshll.u32 %s110_s13, 4  ;;  %s40_s14 = int_to_ptr.vmem [resolvable:$true] %s39_s14 }
  0x78   :  { %v27_v1 = vpop.permute.xlu0 %26 }
  0x79   :  { %29 = vrot.lane.b32.xlu0 %v27_v1, %s109_s12 }
  0xeb   :  { %v30_v2 = vpop.permute.xlu0 %29 }
  0xec   :  { %33 = vst.msk [vmem:[#allocation5] sm:$0xff] %vm32_vm0, %v30_v2 }
  0xed   :  { %44 = dma.vmem_to_hbm [thread:$0]  %s40_s14, 128, %s42_s17, [#allocation4]  }
  0xee   :  { %105 = dma.done.wait [#allocation4], 128  }
  0xef   :  { %106 = vsyncadd [#allocation4], 4294967168 }
  0xf0   :  { %49 = vsyncpa [#allocation3], 1 }
  0xf1   :  { %50 = vsyncpa [#allocation4], 1 }

// kernel: mha_module.5
= control target key start
LH: loop header
LB: loop body
LE: loop exit
PB: predicated region body
PF: predicated region fallthrough
CT: control target
= control target key end

     0   :  { %vm52_vm0 = vcmask 261120   ;;  %vm142_vm1 = vcmask 257024   ;;  %s328_s1 = inlined_call_operand.vmem [shape: bf16[32,32], index: 1, kind: input, shape index: {}]   ;;  %s329_s0 = inlined_call_operand.vmem [shape: f32[128,32], index: 0, kind: input, shape index: {}]   ;;  %s330_s2 = inlined_call_operand.vmem [shape: bf16[128,32], index: 2, kind: output, shape index: {}]  }
   0x1   :  { %v180_v0 = vld [vmem:[%s328_s1 + $0x8] sm:$0xff]  ;;  %v179_v1 = vld [vmem:[%s328_s1] sm:$0xff]  ;;  %v14_v14 = vld [vmem:[%s329_s0 + $0x10] sm:$0xff] }
   0x2   :  { %v12_v2 = vld [vmem:[%s329_s0] sm:$0xff]  ;;  %v13_v3 = vld [vmem:[%s329_s0 + $0x8] sm:$0xff]  ;;  %83 = vmatpush.bf16.msra.mxu0 %v180_v0  ;;  %181 = vmatpush.bf16.msra.mxu1 %v180_v0  ;;  %v15_v15 = vld [vmem:[%s329_s0 + $0x18] sm:$0xff] }
   0x3   :  { %v16_v4 = vld [vmem:[%s329_s0 + $0x20] sm:$0xff]  ;;  %v17_v5 = vld [vmem:[%s329_s0 + $0x28] sm:$0xff]  ;;  %182 = vmatpush.bf16.msra.mxu2 %v180_v0  ;;  %183 = vmatpush.bf16.msra.mxu3 %v180_v0  ;;  %v28_v10 = vpack.c.bf16 %v13_v3, %v12_v2  ;;  %v18_v16 = vld [vmem:[%s329_s0 + $0x30] sm:$0xff]  ;;  %v29_v22 = vpack.c.bf16 %v15_v15, %v14_v14 }
   0x4   :  { %v20_v6 = vld [vmem:[%s329_s0 + $0x40] sm:$0xff]  ;;  %v21_v7 = vld [vmem:[%s329_s0 + $0x48] sm:$0xff]  ;;  %v30_v11 = vpack.c.bf16 %v17_v5, %v16_v4  ;;  %v19_v17 = vld [vmem:[%s329_s0 + $0x38] sm:$0xff] }
   0x5   :  { %v24_v8 = vld [vmem:[%s329_s0 + $0x60] sm:$0xff]  ;;  %v25_v9 = vld [vmem:[%s329_s0 + $0x68] sm:$0xff]  ;;  %v32_v12 = vpack.c.bf16 %v21_v7, %v20_v6  ;;  %v22_v18 = vld [vmem:[%s329_s0 + $0x50] sm:$0xff]  ;;  %v31_v23 = vpack.c.bf16 %v19_v17, %v18_v16 }
   0x6   :  { %84 = vmatpush.bf16.msra.mxu0 %v179_v1  ;;  %184 = vmatpush.bf16.msra.mxu1 %v179_v1  ;;  %v34_v13 = vpack.c.bf16 %v25_v9, %v24_v8  ;;  %v23_v19 = vld [vmem:[%s329_s0 + $0x58] sm:$0xff]  ;;  %v26_v20 = vld [vmem:[%s329_s0 + $0x70] sm:$0xff] }
   0x7   :  { %185 = vmatpush.bf16.msra.mxu2 %v179_v1  ;;  %186 = vmatpush.bf16.msra.mxu3 %v179_v1  ;;  %v27_v21 = vld [vmem:[%s329_s0 + $0x78] sm:$0xff]  ;;  %v33_v24 = vpack.c.bf16 %v23_v19, %v22_v18 }
   0x8   :  { %v35_v25 = vpack.c.bf16 %v27_v21, %v26_v20 }
   0x9   :  { %171 = vmatmul.msk.bf16.vlgmr.msra.gmra.mxu0 %vm52_vm0, %v28_v10  ;;  %173 = vmatmul.msk.bf16.vlgmr.msra.gmra.mxu1 %vm52_vm0, %v30_v11 }
   0xa   :  { %175 = vmatmul.msk.bf16.vlgmr.msra.gmra.mxu2 %vm52_vm0, %v32_v12  ;;  %177 = vmatmul.msk.bf16.vlgmr.msra.gmra.mxu3 %vm52_vm0, %v34_v13 }
  0x19   :  { %172 = vmatmul.msk.bf16.gmra.mxu0 %vm52_vm0, %v29_v22  ;;  %174 = vmatmul.msk.bf16.gmra.mxu1 %vm52_vm0, %v31_v23 }
  0x1a   :  { %176 = vmatmul.msk.bf16.gmra.mxu2 %vm52_vm0, %v33_v24  ;;  %178 = vmatmul.msk.bf16.gmra.mxu3 %vm52_vm0, %v35_v25 }
  0x86   :  { %v86_v26 = vpop.f32.mrf.mxu0  ;;  %v96_v27 = vpop.f32.mrf.mxu1 }
  0x87   :  { %v126_v28 = vpack.c.bf16 %v86_v26, %v86_v26  ;;  %v130_v29 = vpack.c.bf16 %v96_v27, %v96_v27 }
  0x89   :  { %143 = vst.msk [vmem:[%s330_s2] sm:$0xf] %vm142_vm1, %v126_v28 }
  0x8a   :  { %147 = vst.msk [vmem:[%s330_s2 + $0x10] sm:$0xf] %vm142_vm1, %v130_v29 }
  0x8d   :  { %v106_v30 = vpop.f32.mrf.mxu2  ;;  %v116_v31 = vpop.f32.mrf.mxu3 }
  0x8e   :  { %v134_v32 = vpack.c.bf16 %v106_v30, %v106_v30  ;;  %v138_v33 = vpack.c.bf16 %v116_v31, %v116_v31  ;;  %v88_v34 = vpop.f32.mrf.mxu0  ;;  %v98_v35 = vpop.f32.mrf.mxu1 }
  0x8f   :  { %v127_v36 = vpack.c.bf16 %v88_v34, %v88_v34  ;;  %v131_v37 = vpack.c.bf16 %v98_v35, %v98_v35 }
  0x90   :  { %151 = vst.msk [vmem:[%s330_s2 + $0x20] sm:$0xf] %vm142_vm1, %v134_v32 }
  0x91   :  { %155 = vst.msk [vmem:[%s330_s2 + $0x30] sm:$0xf] %vm142_vm1, %v138_v33 }
  0x92   :  { %144 = vst.msk [vmem:[%s330_s2 + $0x4] sm:$0xf] %vm142_vm1, %v127_v36 }
  0x93   :  { %148 = vst.msk [vmem:[%s330_s2 + $0x14] sm:$0xf] %vm142_vm1, %v131_v37 }
  0x95   :  { %v108_v38 = vpop.f32.mrf.mxu2  ;;  %v118_v39 = vpop.f32.mrf.mxu3 }
  0x96   :  { %v135_v40 = vpack.c.bf16 %v108_v38, %v108_v38  ;;  %v139_v41 = vpack.c.bf16 %v118_v39, %v118_v39  ;;  %v91_v42 = vpop.f32.mrf.mxu0  ;;  %v101_v43 = vpop.f32.mrf.mxu1 }
  0x97   :  { %v128_v44 = vpack.c.bf16 %v91_v42, %v91_v42  ;;  %v132_v45 = vpack.c.bf16 %v101_v43, %v101_v43 }
  0x98   :  { %152 = vst.msk [vmem:[%s330_s2 + $0x24] sm:$0xf] %vm142_vm1, %v135_v40 }
  0x99   :  { %156 = vst.msk [vmem:[%s330_s2 + $0x34] sm:$0xf] %vm142_vm1, %v139_v41 }
  0x9a   :  { %145 = vst.msk [vmem:[%s330_s2 + $0x8] sm:$0xf] %vm142_vm1, %v128_v44 }
  0x9b   :  { %149 = vst.msk [vmem:[%s330_s2 + $0x18] sm:$0xf] %vm142_vm1, %v132_v45 }
  0x9d   :  { %v111_v46 = vpop.f32.mrf.mxu2  ;;  %v121_v47 = vpop.f32.mrf.mxu3 }
  0x9e   :  { %v136_v48 = vpack.c.bf16 %v111_v46, %v111_v46  ;;  %v140_v49 = vpack.c.bf16 %v121_v47, %v121_v47  ;;  %v93_v50 = vpop.f32.mrf.mxu0  ;;  %v103_v51 = vpop.f32.mrf.mxu1 }
  0x9f   :  { %v129_v52 = vpack.c.bf16 %v93_v50, %v93_v50  ;;  %v133_v53 = vpack.c.bf16 %v103_v51, %v103_v51 }
  0xa0   :  { %153 = vst.msk [vmem:[%s330_s2 + $0x28] sm:$0xf] %vm142_vm1, %v136_v48 }
  0xa1   :  { %157 = vst.msk [vmem:[%s330_s2 + $0x38] sm:$0xf] %vm142_vm1, %v140_v49 }
  0xa2   :  { %146 = vst.msk [vmem:[%s330_s2 + $0xc] sm:$0xf] %vm142_vm1, %v129_v52 }
  0xa3   :  { %150 = vst.msk [vmem:[%s330_s2 + $0x1c] sm:$0xf] %vm142_vm1, %v133_v53 }
  0xa5   :  { %v113_v54 = vpop.f32.mrf.mxu2  ;;  %v123_v55 = vpop.f32.mrf.mxu3 }
  0xa6   :  { %v137_v56 = vpack.c.bf16 %v113_v54, %v113_v54  ;;  %v141_v57 = vpack.c.bf16 %v123_v55, %v123_v55 }
  0xa8   :  { %154 = vst.msk [vmem:[%s330_s2 + $0x2c] sm:$0xf] %vm142_vm1, %v137_v56 }
  0xa9   :  { %158 = vst.msk [vmem:[%s330_s2 + $0x3c] sm:$0xf] %vm142_vm1, %v141_v57 }

// kernel: mha_module.4
= control target key start
LH: loop header
LB: loop body
LE: loop exit
PB: predicated region body
PF: predicated region fallthrough
CT: control target
= control target key end

     0   :  { %vm25_vm0 = vcmask 261120   ;;  %v225_v8 = vmov 32.0   ;;  %vm188_vm14 = vcmask 781312   ;;  %s325_s0 = inlined_call_operand.vmem [shape: f32[32,32], index: 0, kind: input, shape index: {}]   ;;  %s326_s1 = inlined_call_operand.vmem [shape: f32[1,32], index: 1, kind: input, shape index: {}]   ;;  %s327_s2 = inlined_call_operand.vmem [shape: f32[1,32], index: 2, kind: input, shape index: {}]   ;;  %s328_s4 = inlined_call_operand.vmem [shape: f32[1,96], index: 4, kind: input, shape index: {}]   ;;  %s329_s3 = inlined_call_operand.vmem [shape: bf16[32,96], index: 3, kind: input, shape index: {}]   ;;  %s330_s5 = inlined_call_operand.vmem [shape: bf16[32,96], index: 5, kind: output, shape index: {}]  }
   0x1   :  { %v23_v0 = vld [vmem:[%s325_s0 + $0x10] sm:$0xff]  ;;  %v21_v1 = vld [vmem:[%s325_s0] sm:$0xff]  ;;  %v24_v4 = vld [vmem:[%s325_s0 + $0x18] sm:$0xff]  ;;  %215 = vrcp.f32 %v225_v8 }
   0x2   :  { %v32_v2 = vsel %vm25_vm0, %v23_v0, 0.0  ;;  %v26_v3 = vsel %vm25_vm0, %v21_v1, 0.0  ;;  %v22_v5 = vld [vmem:[%s325_s0 + $0x8] sm:$0xff]  ;;  %v35_v6 = vsel %vm25_vm0, %v24_v4, 0.0  ;;  %v207_v40 = vld [vmem:[%s329_s3] sm:$0xff] }
   0x3   :  { %33 = vadd.xlane.f32.xlu1 %v32_v2  ;;  %27 = vadd.xlane.f32.xlu0 %v26_v3  ;;  %v29_v7 = vsel %vm25_vm0, %v22_v5, 0.0  ;;  %v208_v35 = vld [vmem:[%s329_s3 + $0x8] sm:$0xff] }
   0x4   :  { %171 = vmatpush.bf16.msra.mxu0 %v208_v35  ;;  %209 = vmatpush.bf16.msra.mxu1 %v208_v35 }
   0x7   :  { %v216_v9 = vpop.eup %215 }
   0x8   :  { %v39_v10 = vmul.f32 32.0, %v216_v9  ;;  %vm43_vm1 = vweird.f32 %v216_v9  ;;  %172 = vmatpush.bf16.msra.mxu0 %v207_v40  ;;  %210 = vmatpush.bf16.msra.mxu1 %v207_v40 }
   0xa   :  { %v40_v11 = vsub.f32 1.0, %v39_v10  ;;  %v212_v10 = vld [vmem:[%s326_s1] ss:$0 sm:$0xff] }
   0xb   :  { %36 = vadd.xlane.f32.xlu1 %v35_v6  ;;  %30 = vadd.xlane.f32.xlu0 %v29_v7 }
   0xc   :  { %v41_v12 = vmul.f32 %v216_v9, %v40_v11 }
   0xe   :  { %v42_v13 = vadd.f32 %v216_v9, %v41_v12 }
  0x10   :  { %v44_v14 = vsel %vm43_vm1, %v216_v9, %v42_v13 }
  0x76   :  { %v34_v15 = vpop.xlane.xlu1 %33  ;;  %v28_v16 = vpop.xlane.xlu0 %27 }
  0x77   :  { %v47_v17 = vmul.f32 %v44_v14, %v34_v15  ;;  %v45_v18 = vmul.f32 %v44_v14, %v28_v16 }
  0x79   :  { %v272_v19 = vsub.f32 %v23_v0, %v47_v17  ;;  %v274_v20 = vsub.f32 %v21_v1, %v45_v18  ;;  %v213_v17 = vld [vmem:[%s327_s2] ss:$0 sm:$0xff] }
  0x7b   :  { %v55_v21 = vmul.f32 %v272_v19, %v272_v19  ;;  %v53_v22 = vmul.f32 %v274_v20, %v274_v20 }
  0x7d   :  { %v63_v23 = vsel %vm25_vm0, %v55_v21, 0.0  ;;  %v57_v24 = vsel %vm25_vm0, %v53_v22, 0.0 }
  0x7e   :  { %v37_v25 = vpop.xlane.xlu1 %36  ;;  %64 = vadd.xlane.f32.xlu0 %v63_v23  ;;  %58 = vadd.xlane.f32.xlu2 %v57_v24  ;;  %v31_v26 = vpop.xlane.xlu0 %30 }
  0x7f   :  { %v48_v27 = vmul.f32 %v44_v14, %v37_v25  ;;  %v46_v28 = vmul.f32 %v44_v14, %v31_v26 }
  0x81   :  { %v282_v29 = vsub.f32 %v24_v4, %v48_v27  ;;  %v284_v30 = vsub.f32 %v22_v5, %v46_v28 }
  0x83   :  { %v56_v31 = vmul.f32 %v282_v29, %v282_v29  ;;  %v54_v32 = vmul.f32 %v284_v30, %v284_v30 }
  0x85   :  { %v66_v33 = vsel %vm25_vm0, %v56_v31, 0.0  ;;  %v60_v34 = vsel %vm25_vm0, %v54_v32, 0.0 }
  0x86   :  { %67 = vadd.xlane.f32.xlu1 %v66_v33  ;;  %61 = vadd.xlane.f32.xlu2 %v60_v34 }
  0xf1   :  { %v59_v36 = vpop.xlane.xlu2 %58  ;;  %v65_v37 = vpop.xlane.xlu0 %64 }
  0xf2   :  { %v69_v38 = vmul.f32 %v59_v36, %v44_v14  ;;  %v71_v39 = vmul.f32 %v65_v37, %v44_v14 }
  0xf4   :  { %v73_v41 = vadd.f32 1e-05, %v69_v38  ;;  %v75_v42 = vadd.f32 1e-05, %v71_v39 }
  0xf6   :  { %217 = vrsqrt.f32 %v73_v41  ;;  %vm103_vm4 = vweird.f32 %v75_v42  ;;  %vm83_vm5 = vweird.f32 %v73_v41 }
  0xf7   :  { %219 = vrsqrt.f32 %v75_v42 }
  0xf9   :  { %v68_v43 = vpop.xlane.xlu1 %67  ;;  %v62_v44 = vpop.xlane.xlu2 %61 }
  0xfa   :  { %v72_v45 = vmul.f32 %v68_v43, %v44_v14  ;;  %v70_v46 = vmul.f32 %v62_v44, %v44_v14 }
  0xfc   :  { %v218_v47 = vpop.eup %217  ;;  %v76_v48 = vadd.f32 1e-05, %v72_v45  ;;  %v74_v49 = vadd.f32 1e-05, %v70_v46 }
  0xfd   :  { %v220_v50 = vpop.eup %219  ;;  %v78_v51 = vmul.f32 %v218_v47, %v73_v41  ;;  %vm84_vm3 = vweird.f32 %v218_v47 }
  0xfe   :  { %v98_v52 = vmul.f32 %v220_v50, %v75_v42  ;;  %221 = vrsqrt.f32 %v76_v48  ;;  %vm104_vm2 = vweird.f32 %v220_v50  ;;  %vm85_vm7 = vmor %vm83_vm5, %vm84_vm3  ;;  %vm113_vm10 = vweird.f32 %v76_v48 }
  0xff   :  { %v79_v53 = vmul.f32 %v218_v47, %v78_v51  ;;  %223 = vrsqrt.f32 %v74_v49  ;;  %vm105_vm6 = vmor %vm103_vm4, %vm104_vm2  ;;  %vm93_vm12 = vweird.f32 %v74_v49 }
 0x100   :  { %v99_v54 = vmul.f32 %v220_v50, %v98_v52 }
 0x101   :  { %v80_v55 = vmul.f32 0.5, %v79_v53 }
 0x102   :  { %v100_v56 = vmul.f32 0.5, %v99_v54 }
 0x103   :  { %v81_v57 = vsub.f32 1.5, %v80_v55 }
 0x104   :  { %v222_v58 = vpop.eup %221  ;;  %v101_v59 = vsub.f32 1.5, %v100_v56 }
 0x105   :  { %v224_v60 = vpop.eup %223  ;;  %v108_v61 = vmul.f32 %v222_v58, %v76_v48  ;;  %v82_v62 = vmul.f32 %v218_v47, %v81_v57  ;;  %vm114_vm8 = vweird.f32 %v222_v58 }
 0x106   :  { %v102_v63 = vmul.f32 %v220_v50, %v101_v59  ;;  %v88_v0 = vmul.f32 %v224_v60, %v74_v49  ;;  %vm94_vm9 = vweird.f32 %v224_v60  ;;  %vm115_vm11 = vmor %vm113_vm10, %vm114_vm8 }
 0x107   :  { %v109_v1 = vmul.f32 %v222_v58, %v108_v61  ;;  %v86_v5 = vsel %vm85_vm7, %v218_v47, %v82_v62  ;;  %vm95_vm13 = vmor %vm93_vm12, %vm94_vm9 }
 0x108   :  { %v89_v2 = vmul.f32 %v224_v60, %v88_v0  ;;  %v106_v3 = vsel %vm105_vm6, %v220_v50, %v102_v63  ;;  %v117_v11 = vmul.f32 %v86_v5, %v274_v20 }
 0x109   :  { %v110_v4 = vmul.f32 0.5, %v109_v1  ;;  %v119_v8 = vmul.f32 %v106_v3, %v272_v19 }
 0x10a   :  { %v90_v6 = vmul.f32 0.5, %v89_v2  ;;  %v125_v21 = vmul.f32 %v212_v10, %v117_v11 }
 0x10b   :  { %v111_v7 = vsub.f32 1.5, %v110_v4  ;;  %v127_v18 = vmul.f32 %v212_v10, %v119_v8 }
 0x10c   :  { %v91_v9 = vsub.f32 1.5, %v90_v6  ;;  %v133_v25 = vadd.f32 %v213_v17, %v125_v21 }
 0x10d   :  { %v112_v12 = vmul.f32 %v222_v58, %v111_v7  ;;  %v135_v23 = vadd.f32 %v213_v17, %v127_v18 }
 0x10e   :  { %v92_v13 = vmul.f32 %v224_v60, %v91_v9 }
 0x10f   :  { %v116_v14 = vsel %vm115_vm11, %v222_v58, %v112_v12 }
 0x110   :  { %v120_v15 = vmul.f32 %v116_v14, %v282_v29  ;;  %v96_v16 = vsel %vm95_vm13, %v224_v60, %v92_v13  ;;  %v214_v29 = vld [vmem:[%s328_s4] ss:$0 sm:$0xff] }
 0x111   :  { %v118_v19 = vmul.f32 %v96_v16, %v284_v30 }
 0x112   :  { %v128_v22 = vmul.f32 %v212_v10, %v120_v15 }
 0x113   :  { %v126_v20 = vmul.f32 %v212_v10, %v118_v19 }
 0x114   :  { %v136_v24 = vadd.f32 %v213_v17, %v128_v22 }
 0x115   :  { %v134_v26 = vadd.f32 %v213_v17, %v126_v20 }
 0x116   :  { %v138_v27 = vpack.c.bf16 %v136_v24, %v135_v23 }
 0x117   :  { %v137_v28 = vpack.c.bf16 %v134_v26, %v133_v25 }
 0x118   :  { %206 = vmatmul.msk.bf16.vlgmr.msra.gmra.mxu1 %vm25_vm0, %v138_v27 }
 0x119   :  { %205 = vmatmul.msk.bf16.vlgmr.msra.gmra.mxu0 %vm25_vm0, %v137_v28 }
 0x195   :  { %v179_v31 = vpop.f32.mrf.mxu1 }
 0x196   :  { %v174_v32 = vpop.f32.mrf.mxu0  ;;  %v180_v30 = vadd.f32 %v214_v29, %v179_v31 }
 0x197   :  { %v175_v33 = vadd.f32 %v214_v29, %v174_v32 }
 0x198   :  { %v186_v34 = vpack.c.bf16 %v180_v30, %v180_v30 }
 0x199   :  { %v184_v35 = vpack.c.bf16 %v175_v33, %v175_v33 }
 0x19a   :  { %191 = vst.msk [vmem:[%s330_s5 + $0x8] sm:$0xf] %vm188_vm14, %v186_v34 }
 0x19b   :  { %189 = vst.msk [vmem:[%s330_s5] sm:$0xf] %vm188_vm14, %v184_v35 }
 0x19d   :  { %v181_v36 = vpop.f32.mrf.mxu1 }
 0x19e   :  { %v176_v37 = vpop.f32.mrf.mxu0  ;;  %v182_v38 = vadd.f32 %v214_v29, %v181_v36 }
 0x19f   :  { %v177_v39 = vadd.f32 %v214_v29, %v176_v37 }
 0x1a0   :  { %v187_v40 = vpack.c.bf16 %v182_v38, %v182_v38 }
 0x1a1   :  { %v185_v41 = vpack.c.bf16 %v177_v39, %v177_v39 }
 0x1a2   :  { %192 = vst.msk [vmem:[%s330_s5 + $0xc] sm:$0xf] %vm188_vm14, %v187_v40 }
 0x1a3   :  { %190 = vst.msk [vmem:[%s330_s5 + $0x4] sm:$0xf] %vm188_vm14, %v185_v41 }

// kernel: mha_module.7
= control target key start
LH: loop header
LB: loop body
LE: loop exit
PB: predicated region body
PF: predicated region fallthrough
CT: control target
= control target key end

     0   :  { %vm52_vm0 = vcmask 261120   ;;  %s189_s1 = inlined_call_operand.vmem [shape: bf16[32,32], index: 1, kind: input, shape index: {}]   ;;  %s190_s2 = inlined_call_operand.vmem [shape: f32[1,32], index: 2, kind: input, shape index: {}]   ;;  %s191_s0 = inlined_call_operand.vmem [shape: bf16[32,32], index: 0, kind: input, shape index: {}]   ;;  %s192_s3 = inlined_call_operand.vmem [shape: f32[32,32], index: 3, kind: input, shape index: {}]   ;;  %s193_s4 = inlined_call_operand.vmem [shape: f32[32,32], index: 4, kind: output, shape index: {}]  }
   0x1   :  { %v115_v0 = vld [vmem:[%s189_s1 + $0x8] sm:$0xff]  ;;  %v114_v1 = vld [vmem:[%s189_s1] sm:$0xff]  ;;  %v80_v8 = vld [vmem:[%s192_s3 + $0x10] sm:$0xff] }
   0x2   :  { %65 = vmatpush.bf16.msra.mxu0 %v115_v0  ;;  %116 = vmatpush.bf16.msra.mxu1 %v115_v0  ;;  %v112_v2 = vld [vmem:[%s191_s0] sm:$0xff]  ;;  %v113_v3 = vld [vmem:[%s191_s0 + $0x8] sm:$0xff]  ;;  %v81_v16 = vld [vmem:[%s192_s3 + $0x18] sm:$0xff] }
   0x3   :  { %v118_v4 = vld [vmem:[%s190_s2] ss:$0 sm:$0xff]  ;;  %v79_v14 = vld [vmem:[%s192_s3 + $0x8] sm:$0xff] }
   0x4   :  { %v78_v6 = vld [vmem:[%s192_s3] sm:$0xff] }
   0x6   :  { %66 = vmatpush.bf16.msra.mxu0 %v114_v1  ;;  %117 = vmatpush.bf16.msra.mxu1 %v114_v1 }
   0x9   :  { %110 = vmatmul.msk.bf16.vlgmr.msra.gmra.mxu0 %vm52_vm0, %v112_v2  ;;  %111 = vmatmul.msk.bf16.vlgmr.msra.gmra.mxu1 %vm52_vm0, %v113_v3 }
  0x86   :  { %v68_v5 = vpop.f32.mrf.mxu0  ;;  %v73_v7 = vpop.f32.mrf.mxu1 }
  0x87   :  { %v69_v9 = vadd.f32 %v118_v4, %v68_v5  ;;  %v74_v10 = vadd.f32 %v118_v4, %v73_v7 }
  0x89   :  { %v82_v11 = vadd.f32 %v78_v6, %v69_v9  ;;  %v84_v12 = vadd.f32 %v80_v8, %v74_v10 }
  0x8b   :  { %86 = vst.msk [vmem:[%s193_s4] sm:$0xff] %vm52_vm0, %v82_v11 }
  0x8c   :  { %88 = vst.msk [vmem:[%s193_s4 + $0x10] sm:$0xff] %vm52_vm0, %v84_v12 }
  0x8e   :  { %v70_v13 = vpop.f32.mrf.mxu0  ;;  %v75_v15 = vpop.f32.mrf.mxu1 }
  0x8f   :  { %v71_v17 = vadd.f32 %v118_v4, %v70_v13  ;;  %v76_v18 = vadd.f32 %v118_v4, %v75_v15 }
  0x91   :  { %v83_v19 = vadd.f32 %v79_v14, %v71_v17  ;;  %v85_v20 = vadd.f32 %v81_v16, %v76_v18 }
  0x93   :  { %87 = vst.msk [vmem:[%s193_s4 + $0x8] sm:$0xff] %vm52_vm0, %v83_v19 }
  0x94   :  { %89 = vst.msk [vmem:[%s193_s4 + $0x18] sm:$0xff] %vm52_vm0, %v85_v20 }

// kernel: mha_module.6
= control target key start
LH: loop header
LB: loop body
LE: loop exit
PB: predicated region body
PF: predicated region fallthrough
CT: control target
= control target key end

     0   :  { %s1327_s18 = smov 0   ;;  %s1713_s0 = inlined_call_operand.vmem [shape: bf16[2,16,96], index: 0, kind: input, shape index: {}]   ;;  %s1714_s1 = inlined_call_operand.vmem [shape: bf16[128,32], index: 1, kind: input, shape index: {}]   ;;  %s1715_s2 = inlined_call_operand.vmem [shape: bf16[1,32], index: 2, kind: input, shape index: {}]   ;;  %s1716_s3 = inlined_call_operand.vmem [shape: bf16[1,32], index: 3, kind: input, shape index: {}]   ;;  %s1717_s4 = inlined_call_operand.vmem [shape: f32[2,1,16], index: 4, kind: input, shape index: {}]   ;;  %s1718_s5 = inlined_call_operand.vmem [shape: bf16[2,16,32], index: 5, kind: output, shape index: {}]  }
   0x1 LB: > { %s1143_s19 = sadd.s32 4294967295, %s1277_s18   ;;  %p1147_p0 = scmp.ge.s32.totalorder %s1277_s18, 1  ;;  %s1277_s18 = sphi %s1327_s18, %s15_s18  }
   0x2   : > { %p195_p1 = scmp.lt.s32.totalorder %s1277_s18, 3 }
   0x4   : > { %p196_p2 = pnand %p1147_p0, %p195_p1 }
   0x5   : > { %p226_p3 = scmp.lt.s32.totalorder (!%p196_p2), %s1143_s19, 1  ;;  %s1279_s9 = smov (!%p196_p2), 96  }
   0x6   : > { %199 = sbr.rel (%p196_p2) target bundleno = 2930 (0xb72), region = 40  ;;  %s1280_s20 = smov (!%p196_p2), 127  }
   0x7   : > { %s1281_s21 = smov (!%p196_p2), 126   ;;  %s1282_s24 = smov (!%p196_p2), 124  }
   0x8   : > { %s1283_s25 = smov (!%p196_p2), 120   ;;  %s1285_s30 = smov (!%p196_p2), 112  }
   0x9   : > { %s1287_s7 = smov (!%p196_p2), 88   ;;  %s1288_s8 = smov (!%p196_p2), 80  }
   0xa   : > { %s1291_s12 = smov (!%p196_p2), 72   ;;  %s1292_s13 = smov (!%p196_p2), 56  }
   0xb   : > { %v1338_v0 = vld [vmem:[%s1714_s1 + $0x38] sm:$0xff]  ;;  %vm320_vm0 = vcmask 64512   ;;  %v1345_v2 = vld [vmem:[%s1714_s1 + $0x30] sm:$0xff]  ;;  %v1352_v4 = vld [vmem:[%s1714_s1 + $0x28] sm:$0xff]  ;;  %s1726_s19 = smov (!%p226_p3, %s1143_s19), 1  ;;  %v362_v31 = vlaneseq  ;;  %vm479_vm10 = vcmask 130048  }
   0xc   : > { %v346_v1 = vsel %vm320_vm0, %v1338_v0, 0  ;;  %v343_v3 = vsel %vm320_vm0, %v1345_v2, 0  ;;  %v340_v5 = vsel %vm320_vm0, %v1352_v4, 0  ;;  %v1361_v6 = vld [vmem:[%s1714_s1 + $0x20] sm:$0xff]  ;;  %s1202_s28 = sshll.u32 %s1726_s19, 3  ;;  %v1376_v9 = vld [vmem:[%s1714_s1 + $0x18] sm:$0xff]  ;;  %s233_s29 = scalar_lea.vmem %s1717_s4, %s1726_s19 }
   0xd   : > { %348 = vmatpush.bf16.xpose.msra.mxu0 %v346_v1  ;;  %v337_v7 = vsel %vm320_vm0, %v1361_v6, 0  ;;  %s230_s6 = scalar_lea.vmem %s1713_s0, %s1202_s28  ;;  %v334_v10 = vsel %vm320_vm0, %v1376_v9, 0  ;;  %v1384_v11 = vld [vmem:[%s1714_s1 + $0x10] sm:$0xff]  ;;  %v259_v13 = vld [vmem:[%s1716_s3] sm:$0x1]  ;;  %v1394_v14 = vld [vmem:[%s1714_s1 + $0x8] sm:$0xff]  ;;  %s1521_s11 = scalar_lea.vmem %s1718_s5, %s1202_s28 }
   0xe   : > { %v1371_v8 = vld [vmem:[%s230_s6] sm:$0xff]  ;;  %v331_v12 = vsel %vm320_vm0, %v1384_v11, 0  ;;  %v273_v15 = vpack.i.b16 %v259_v13, %v259_v13  ;;  %v328_v16 = vsel %vm320_vm0, %v1394_v14, 0  ;;  %v363_v32 = vshrl.u32 %v362_v31, 7  ;;  %s1289_s19 = smov 104   ;;  %s1290_s28 = smov 48  }
   0xf   : > { %450 = vrot.lane.b32.xlu0 %v1371_v8, %s1279_s9  ;;  %v240_v18 = vld [vmem:[%s230_s6] sm:$0xff]   ;;  %s1286_s6 = smov 64   ;;  %vm525_vm12 = vcmask 60416   ;;  %s1293_s14 = smov 40   ;;  %vm710_vm13 = vcmask 126016   ;;  %vm893_vm14 = vcmask 191616  }
  0x10   : > { %v275_v17 = vperm.slane %v273_v15, 0  ;;  %v1401_v19 = vld [vmem:[%s1714_s1] sm:$0xff]  ;;  %v266_v20 = vunpack.c.l.bf16 %v240_v18  ;;  %v267_v21 = vunpack.c.h.bf16 %v240_v18  ;;  %v1412_v33 = vsub.s32 15, %v363_v32  ;;  %s1294_s15 = smov 16   ;;  %s1295_s16 = smov 8  }
  0x11   : > { %v325_v23 = vsel %vm320_vm0, %v1401_v19, 0  ;;  %v364_v35 = vadd.s32 8, %v363_v32  ;;  %v258_v44 = vld [vmem:[%s1715_s2] sm:$0x1]  ;;  %v1284_v15 = vmov 0   ;;  %s1296_s17 = smov 24  }
  0x12   : > { %v276_v22 = vunpack.c.l.bf16 %v275_v17  ;;  %v375_v34 = vand.u32 1, %v1412_v33  ;;  %v263_v45 = vpack.i.b16 %v258_v44, %v258_v44  ;;  %v393_v55 = vshra.s32 %v1412_v33, 1 }
  0x13   : > { %v366_v37 = vsub.s32 15, %v364_v35  ;;  %v413_v59 = vshra.s32 %v1412_v33, 2  ;;  %vm1076_vm15 = vcmask 257216  }
  0x14   : > { %v277_v24 = vadd.f32 %v276_v22, %v266_v20  ;;  %v278_v25 = vadd.f32 %v276_v22, %v267_v21  ;;  %vm1415_vm1 = vcmp.eq.s32.totalorder %v375_v34, 1  ;;  %v265_v46 = vperm.slane %v263_v45, 0 }
  0x15   : > { %349 = vmatpush.bf16.xpose.msra.mxu0 %v343_v3  ;;  %v376_v40 = vand.u32 1, %v366_v37  ;;  %v394_v47 = vshra.s32 %v366_v37, 1  ;;  %v1443_v56 = vand.u32 1, %v393_v55  ;;  %v1450_v60 = vand.u32 1, %v413_v59 }
  0x16   : > { %v1405_v26 = vpack.c.bf16 %v278_v25, %v277_v24  ;;  %v268_v48 = vunpack.c.l.bf16 %v265_v46  ;;  %v414_v61 = vshra.s32 %v366_v37, 2 }
  0x17   : > { %vm1422_vm2 = vcmp.eq.s32.totalorder %v376_v40, 1  ;;  %v1432_v51 = vand.u32 1, %v394_v47  ;;  %vm397_vm4 = vcmp.eq.s32.totalorder %v1443_v56, 1  ;;  %vm417_vm5 = vcmp.eq.s32.totalorder %v1450_v60, 1 }
  0x18   : > { %v269_v49 = vadd.f32 %v268_v48, %v266_v20  ;;  %v270_v50 = vadd.f32 %v268_v48, %v267_v21  ;;  %v1456_v1 = vand.u32 1, %v414_v61 }
  0x19   : > { %vm398_vm3 = vcmp.eq.s32.totalorder %v1432_v51, 1 }
  0x1a   : > { %v1434_v52 = vpack.c.bf16 %v270_v50, %v269_v49  ;;  %vm418_vm6 = vcmp.eq.s32.totalorder %v1456_v1, 1 }
  0x1d   : > { %350 = vmatpush.bf16.xpose.msra.mxu0 %v340_v5 }
  0x25   : > { %351 = vmatpush.bf16.xpose.msra.mxu0 %v337_v7 }
  0x2d   : > { %352 = vmatpush.bf16.xpose.msra.mxu0 %v334_v10  ;;  %v434_v10 = vshra.s32 %v366_v37, 3 }
  0x2f   : > { %v1466_v13 = vand.u32 1, %v434_v10 }
  0x31   : > { %vm438_vm8 = vcmp.eq.s32.totalorder %v1466_v13, 1 }
  0x35   : > { %353 = vmatpush.bf16.xpose.msra.mxu0 %v331_v12  ;;  %v260_v12 = vld [vmem:[%s233_s29] sm:$0x1] }
  0x36   : > { %vm261_vm7 = vcmp.gt.f32.partialorder %v260_v12, 0.5 }
  0x3d   : > { %354 = vmatpush.bf16.xpose.msra.mxu0 %v328_v16  ;;  %v474_v16 = vsel %vm261_vm7, 1, %v1284_v15 }
  0x3e   : > { %v475_v18 = vperm.slane %v474_v16, 0 }
  0x40   : > { %vm1471_vm9 = vcmp.eq.s32.totalorder %v475_v18, 1 }
  0x45   : > { %355 = vmatpush.bf16.xpose.msra.mxu0 %v325_v23 }
  0x4c   : > { %1184 = vmatmul.msk.bf16.vlgmr.msra.gmra.mxu0 %vm320_vm0, %v1405_v26 }
  0x81   : > { %v451_v27 = vpop.permute.xlu0 %450 }
  0x82   : > { %v456_v28 = vsel %vm320_vm0, %v451_v27, 0  ;;  %v433_v27 = vshra.s32 %v1412_v33, 3 }
  0x83   : > { %465 = vmatpush.bf16.xpose.msrb.mxu0 %v456_v28 }
  0x8a   : > { %1189 = vmatmul.msk.bf16.vlgmr.msrb.gmra.mxu0 %vm320_vm0, %v1434_v52 }
  0xc9   : > { %v357_v29 = vpop.f32.mrf.mxu0 }
  0xca   : > { %369 = vrot.lane.b32.xlu0 %v357_v29, %s1280_s20 }
  0xd1   : > { %v359_v30 = vpop.f32.mrf.mxu0 }
  0xd2   : > { %371 = vrot.lane.b32.xlu1 %v359_v30, %s1280_s20 }
 0x107   : > { %v467_v7 = vpop.f32.mrf.mxu0 }
 0x10f   : > { %v469_v17 = vpop.f32.mrf.mxu0 }
 0x13c   : > { %v370_v38 = vpop.permute.xlu0 %369 }
 0x13d   : > { %v383_v39 = vsel %vm1415_vm1, %v370_v38, %v357_v29  ;;  %v1479_v29 = vand.u32 1, %v433_v27 }
 0x13e   : > { %387 = vrot.lane.b32.xlu1 %v383_v39, %s1281_s21 }
 0x13f   : > { %vm437_vm11 = vcmp.eq.s32.totalorder %v1479_v29, 1 }
 0x144   : > { %v372_v42 = vpop.permute.xlu1 %371 }
 0x145   : > { %v384_v43 = vsel %vm1422_vm2, %v372_v42, %v359_v30 }
 0x146   : > { %389 = vrot.lane.b32.xlu2 %v384_v43, %s1281_s21 }
 0x1a0   : > { %v390_v53 = vpop.permute.xlu2 %389 }
 0x1a1   : > { %v404_v54 = vsel %vm398_vm3, %v390_v53, %v384_v43 }
 0x1a2   : > { %409 = vrot.lane.b32.xlu0 %v404_v54, %s1282_s24 }
 0x1b0   : > { %v388_v57 = vpop.permute.xlu1 %387 }
 0x1b1   : > { %v403_v58 = vsel %vm397_vm4, %v388_v57, %v383_v39 }
 0x1b2   : > { %407 = vrot.lane.b32.xlu2 %v403_v58, %s1282_s24 }
 0x20c   : > { %v408_v62 = vpop.permute.xlu2 %407 }
 0x20d   : > { %v423_v63 = vsel %vm417_vm5, %v408_v62, %v403_v58 }
 0x20e   : > { %427 = vrot.lane.b32.xlu1 %v423_v63, %s1283_s25 }
 0x214   : > { %v410_v3 = vpop.permute.xlu0 %409 }
 0x215   : > { %v424_v5 = vsel %vm418_vm6, %v410_v3, %v404_v54 }
 0x216   : > { %429 = vrot.lane.b32.xlu2 %v424_v5, %s1283_s25 }
 0x270   : > { %v430_v20 = vpop.permute.xlu2 %429 }
 0x271   : > { %v444_v21 = vsel %vm438_vm8, %v430_v20, %v424_v5 }
 0x272   : > { %v470_v22 = vadd.f32 %v469_v17, %v444_v21 }
 0x274   : > { %v473_v24 = vmul.f32 0.35355338, %v470_v22 }
 0x276   : > { %v478_v25 = vsel %vm1471_vm9, -1e+30, %v473_v24 }
 0x277   : > { %v483_v28 = vsel %vm479_vm10, %v478_v25, -inf }
 0x278   : > { %484 = vmax.xlane.f32.xlu1 %v483_v28 }
 0x280   : > { %v428_v30 = vpop.permute.xlu1 %427 }
 0x281   : > { %v443_v31 = vsel %vm437_vm11, %v428_v30, %v423_v63 }
 0x282   : > { %v468_v32 = vadd.f32 %v467_v7, %v443_v31 }
 0x284   : > { %v472_v34 = vmul.f32 0.35355338, %v468_v32 }
 0x286   : > { %v477_v35 = vsel %vm1471_vm9, -1e+30, %v472_v34 }
 0x287   : > { %v480_v37 = vsel %vm479_vm10, %v477_v35, -inf }
 0x288   : > { %481 = vmax.xlane.f32.xlu0 %v480_v37 }
 0x291   : > { %729 = vrot.lane.b32.xlu1 %v1338_v0, %s1285_s30 }
 0x299   : > { %723 = vrot.lane.b32.xlu1 %v1361_v6, %s1285_s30 }
 0x29c   : > { %503 = vrot.lane.b32.xlu0 %v1371_v8, %s1286_s6 }
 0x2a1   : > { %719 = vrot.lane.b32.xlu1 %v1384_v11, %s1285_s30 }
 0x2a4   : > { %725 = vrot.lane.b32.xlu0 %v1352_v4, %s1285_s30 }
 0x2a9   : > { %715 = vrot.lane.b32.xlu1 %v1401_v19, %s1285_s30 }
 0x2ac   : > { %721 = vrot.lane.b32.xlu0 %v1376_v9, %s1285_s30 }
 0x2b1   : > { %812 = vrot.lane.b32.xlu1 %v1434_v52, %s1285_s30 }
 0x2b4   : > { %629 = vrot.lane.b32.xlu0 %v1434_v52, %s1283_s25 }
 0x2bc   : > { %713 = vrot.lane.b32.xlu0 %v1405_v26, %s1285_s30 }
 0x2eb   : > { %v485_v33 = vpop.xlane.xlu1 %484 }
 0x2ec   : > { %v487_v40 = vsub.f32 %v478_v25, %v485_v33 }
 0x2ee   : > { %v490_v43 = vmul.f32 1.442695, %v487_v40 }
 0x2fb   : > { %v482_v38 = vpop.xlane.xlu0 %481 }
 0x2fc   : > { %v486_v39 = vsub.f32 %v477_v35, %v482_v38 }
 0x2fe   : > { %v488_v42 = vmul.f32 1.442695, %v486_v39 }
 0x300   : > { %1239 = vpow2.f32 %v488_v42 }
 0x301   : > { %1241 = vpow2.f32 %v490_v43 }
 0x303   : > { %v730_v62 = vpop.permute.xlu1 %729 }
 0x304   : > { %v756_v5 = vsel %vm320_vm0, %v730_v62, 0 }
 0x306   : > { %v1240_v44 = vpop.eup %1239 }
 0x307   : > { %v492_v45 = vsel %vm479_vm10, %v1240_v44, 0.0  ;;  %v1242_v46 = vpop.eup %1241 }
 0x308   : > { %493 = vadd.xlane.f32.xlu2 %v492_v45  ;;  %v495_v47 = vsel %vm479_vm10, %v1242_v46, 0.0 }
 0x30b   : > { %v724_v16 = vpop.permute.xlu1 %723 }
 0x30c   : > { %v747_v17 = vsel %vm320_vm0, %v724_v16, 0 }
 0x30e   : > { %v504_v48 = vpop.permute.xlu0 %503 }
 0x30f   : > { %516 = vmatpush.bf16.msra.mxu2 %v504_v48 }
 0x310   : > { %496 = vadd.xlane.f32.xlu2 %v495_v47 }
 0x313   : > { %v720_v20 = vpop.permute.xlu1 %719 }
 0x314   : > { %v741_v21 = vsel %vm320_vm0, %v720_v20, 0 }
 0x316   : > { %v726_v55 = vpop.permute.xlu0 %725 }
 0x317   : > { %v750_v15 = vsel %vm320_vm0, %v726_v55, 0 }
 0x31b   : > { %v716_v25 = vpop.permute.xlu1 %715 }
 0x31c   : > { %v735_v27 = vsel %vm320_vm0, %v716_v25, 0 }
 0x31e   : > { %v722_v63 = vpop.permute.xlu0 %721 }
 0x31f   : > { %v744_v18 = vsel %vm320_vm0, %v722_v63, 0 }
 0x323   : > { %v813_v42 = vpop.permute.xlu1 %812 }
 0x326   : > { %v630_v10 = vpop.permute.xlu0 %629 }
 0x328   : > { %727 = vrot.lane.b32.xlu2 %v1345_v2, %s1285_s30 }
 0x32e   : > { %v714_v28 = vpop.permute.xlu0 %713 }
 0x330   : > { %631 = vrot.lane.b32.xlu2 %v1371_v8, %s1287_s7 }
 0x338   : > { %717 = vrot.lane.b32.xlu2 %v1394_v14, %s1285_s30 }
 0x340   : > { %814 = vrot.lane.b32.xlu2 %v1371_v8, %s1288_s8 }
 0x37b   : > { %v494_v49 = vpop.xlane.xlu2 %493 }
 0x37c   : > { %1243 = vrcp.f32 %v494_v49 }
 0x382   : > { %v1244_v53 = vpop.eup %1243 }
 0x383   : > { %v497_v50 = vpop.xlane.xlu2 %496  ;;  %v500_v58 = vmul.f32 %v1244_v53, %v1240_v44 }
 0x384   : > { %1245 = vrcp.f32 %v497_v50 }
 0x38a   : > { %v1246_v54 = vpop.eup %1245 }
 0x38b   : > { %v728_v57 = vpop.permute.xlu2 %727  ;;  %v501_v59 = vmul.f32 %v1246_v54, %v1242_v46 }
 0x38c   : > { %v753_v12 = vsel %vm320_vm0, %v728_v57, 0 }
 0x38d   : > { %v502_v61 = vpack.c.bf16 %v501_v59, %v500_v58 }
 0x38f   : > { %1190 = vmatmul.msk.bf16.vlgmr.msra.gmra.mxu2 %vm479_vm10, %v502_v61 }
 0x393   : > { %v632_v3 = vpop.permute.xlu2 %631 }
 0x394   : > { %v637_v7 = vsel %vm320_vm0, %v632_v3, 0 }
 0x395   : > { %646 = vmatpush.bf16.xpose.msrb.mxu2 %v637_v7 }
 0x39b   : > { %v718_v22 = vpop.permute.xlu2 %717 }
 0x39c   : > { %v738_v24 = vsel %vm320_vm0, %v718_v22, 0 }
 0x39d   : > { %758 = vmatpush.bf16.xpose.msra.mxu2 %v756_v5 }
 0x39f   : > { %1192 = vmatmul.msk.bf16.vlgmr.msrb.gmra.mxu2 %vm320_vm0, %v630_v10 }
 0x3a3   : > { %v815_v39 = vpop.permute.xlu2 %814 }
 0x3a4   : > { %v820_v40 = vsel %vm320_vm0, %v815_v39, 0 }
 0x3a5   : > { %759 = vmatpush.bf16.xpose.msra.mxu2 %v753_v12  ;;  %829 = vmatpush.bf16.xpose.msra.mxu1 %v820_v40 }
 0x3ac   : > { %1195 = vmatmul.msk.bf16.vlgmr.msra.gmra.mxu1 %vm320_vm0, %v813_v42 }
 0x3ad   : > { %760 = vmatpush.bf16.xpose.msra.mxu2 %v750_v15 }
 0x3b5   : > { %761 = vmatpush.bf16.xpose.msra.mxu2 %v747_v17 }
 0x3bd   : > { %762 = vmatpush.bf16.xpose.msra.mxu2 %v744_v18 }
 0x3c5   : > { %763 = vmatpush.bf16.xpose.msra.mxu2 %v741_v21 }
 0x3cd   : > { %764 = vmatpush.bf16.xpose.msra.mxu2 %v738_v24 }
 0x3d5   : > { %765 = vmatpush.bf16.xpose.msra.mxu2 %v735_v27 }
 0x3dc   : > { %1194 = vmatmul.msk.bf16.vlgmr.msra.gmra.mxu2 %vm320_vm0, %v714_v28 }
 0x412   : > { %v518_v30 = vpop.f32.mrf.mxu2 }
 0x413   : > { %v523_v31 = vpack.c.bf16 %v518_v30, %v518_v30 }
 0x415   : > { %526 = vst.msk [vmem:[%s1521_s11] sm:$0xf] %vm525_vm12, %v523_v31 }
 0x41a   : > { %v520_v32 = vpop.f32.mrf.mxu2 }
 0x41b   : > { %v524_v34 = vpack.c.bf16 %v520_v32, %v520_v32 }
 0x41d   : > { %527 = vst.msk [vmem:[%s1521_s11 + $0x4] sm:$0xf] %vm525_vm12, %v524_v34 }
 0x422   : > { %v1525_v35 = vpop.f32.mrf.mxu2 }
 0x429   : > { %v831_v59 = vpop.f32.mrf.mxu1 }
 0x42a   : > { %v1527_v37 = vpop.f32.mrf.mxu2 }
 0x431   : > { %v833_v5 = vpop.f32.mrf.mxu1 }
 0x45f   : > { %v767_v33 = vpop.f32.mrf.mxu2 }
 0x460   : > { %774 = vrot.lane.b32.xlu0 %v767_v33, %s1280_s20 }
 0x467   : > { %v769_v38 = vpop.f32.mrf.mxu2 }
 0x468   : > { %776 = vrot.lane.b32.xlu2 %v769_v38, %s1280_s20 }
 0x4c2   : > { %v777_v43 = vpop.permute.xlu2 %776 }
 0x4c3   : > { %v781_v44 = vsel %vm1422_vm2, %v777_v43, %v769_v38 }
 0x4c4   : > { %786 = vrot.lane.b32.xlu0 %v781_v44, %s1281_s21 }
 0x4d2   : > { %v775_v45 = vpop.permute.xlu0 %774 }
 0x4d3   : > { %v780_v46 = vsel %vm1415_vm1, %v775_v45, %v767_v33 }
 0x4d4   : > { %784 = vrot.lane.b32.xlu1 %v780_v46, %s1281_s21 }
 0x536   : > { %v787_v47 = vpop.permute.xlu0 %786 }
 0x537   : > { %v791_v48 = vsel %vm398_vm3, %v787_v47, %v781_v44 }
 0x538   : > { %796 = vrot.lane.b32.xlu1 %v791_v48, %s1282_s24 }
 0x540   : > { %545 = vrot.lane.b32.xlu1 %v1338_v0, %s1283_s25 }
 0x546   : > { %v785_v49 = vpop.permute.xlu1 %784 }
 0x547   : > { %v790_v50 = vsel %vm397_vm4, %v785_v49, %v780_v46 }
 0x548   : > { %794 = vrot.lane.b32.xlu2 %v790_v50, %s1282_s24  ;;  %543 = vrot.lane.b32.xlu1 %v1345_v2, %s1283_s25 }
 0x550   : > { %541 = vrot.lane.b32.xlu1 %v1352_v4, %s1283_s25 }
 0x558   : > { %912 = vrot.lane.b32.xlu1 %v1338_v0, %s1289_s19 }
 0x560   : > { %539 = vrot.lane.b32.xlu1 %v1361_v6, %s1283_s25 }
 0x568   : > { %910 = vrot.lane.b32.xlu1 %v1345_v2, %s1289_s19 }
 0x570   : > { %535 = vrot.lane.b32.xlu1 %v1384_v11, %s1283_s25 }
 0x578   : > { %906 = vrot.lane.b32.xlu1 %v1361_v6, %s1289_s19 }
 0x580   : > { %533 = vrot.lane.b32.xlu1 %v1394_v14, %s1283_s25 }
 0x5a2   : > { %v795_v53 = vpop.permute.xlu2 %794 }
 0x5a3   : > { %v800_v54 = vsel %vm417_vm5, %v795_v53, %v790_v50 }
 0x5a4   : > { %804 = vrot.lane.b32.xlu0 %v800_v54, %s1283_s25 }
 0x5aa   : > { %v797_v0 = vpop.permute.xlu1 %796 }
 0x5ab   : > { %v801_v55 = vsel %vm418_vm6, %v797_v0, %v791_v48 }
 0x5ac   : > { %806 = vrot.lane.b32.xlu2 %v801_v55, %s1283_s25  ;;  %537 = vrot.lane.b32.xlu0 %v1376_v9, %s1283_s25 }
 0x5b2   : > { %v546_v2 = vpop.permute.xlu1 %545 }
 0x5b3   : > { %v572_v58 = vsel %vm320_vm0, %v546_v2, 0 }
 0x5b4   : > { %908 = vrot.lane.b32.xlu2 %v1352_v4, %s1289_s19  ;;  %574 = vmatpush.bf16.xpose.msra.mxu3 %v572_v58 }
 0x5ba   : > { %v544_v6 = vpop.permute.xlu1 %543 }
 0x5bb   : > { %v569_v61 = vsel %vm320_vm0, %v544_v6, 0 }
 0x5bc   : > { %531 = vrot.lane.b32.xlu2 %v1401_v19, %s1283_s25  ;;  %575 = vmatpush.bf16.xpose.msra.mxu3 %v569_v61 }
 0x5c2   : > { %v542_v57 = vpop.permute.xlu1 %541 }
 0x5c3   : > { %v566_v3 = vsel %vm320_vm0, %v542_v57, 0 }
 0x5c4   : > { %576 = vmatpush.bf16.xpose.msra.mxu3 %v566_v3 }
 0x5ca   : > { %v913_v62 = vpop.permute.xlu1 %912 }
 0x5d2   : > { %v540_v7 = vpop.permute.xlu1 %539 }
 0x5d3   : > { %v563_v17 = vsel %vm320_vm0, %v540_v7, 0 }
 0x5d4   : > { %577 = vmatpush.bf16.xpose.msra.mxu3 %v563_v17 }
 0x5da   : > { %v911_v18 = vpop.permute.xlu1 %910 }
 0x5db   : > { %v936_v0 = vsel %vm320_vm0, %v911_v18, 0 }
 0x5e2   : > { %v536_v22 = vpop.permute.xlu1 %535 }
 0x5e3   : > { %v557_v34 = vsel %vm320_vm0, %v536_v22, 0 }
 0x5ea   : > { %v907_v32 = vpop.permute.xlu1 %906 }
 0x5eb   : > { %v930_v2 = vsel %vm320_vm0, %v907_v32, 0 }
 0x5f2   : > { %v534_v38 = vpop.permute.xlu1 %533 }
 0x5f3   : > { %v554_v39 = vsel %vm320_vm0, %v534_v38, 0 }
 0x606   : > { %v807_v63 = vpop.permute.xlu2 %806 }
 0x607   : > { %v811_v4 = vsel %vm438_vm8, %v807_v63, %v801_v55 }
 0x608   : > { %v834_v10 = vadd.f32 %v833_v5, %v811_v4 }
 0x60a   : > { %v837_v12 = vmul.f32 0.35355338, %v834_v10 }
 0x60c   : > { %v839_v15 = vsel %vm1471_vm9, -1e+30, %v837_v12 }
 0x60d   : > { %v843_v16 = vsel %vm479_vm10, %v839_v15, -inf }
 0x60e   : > { %844 = vmax.xlane.f32.xlu2 %v843_v16  ;;  %v909_v33 = vpop.permute.xlu2 %908 }
 0x60f   : > { %v933_v55 = vsel %vm320_vm0, %v909_v33, 0 }
 0x616   : > { %v805_v20 = vpop.permute.xlu0 %804  ;;  %v532_v40 = vpop.permute.xlu2 %531 }
 0x617   : > { %v810_v21 = vsel %vm437_vm11, %v805_v20, %v800_v54  ;;  %v551_v42 = vsel %vm320_vm0, %v532_v40, 0 }
 0x618   : > { %v832_v24 = vadd.f32 %v831_v59, %v810_v21 }
 0x61a   : > { %v836_v25 = vmul.f32 0.35355338, %v832_v24 }
 0x61c   : > { %v838_v27 = vsel %vm1471_vm9, -1e+30, %v836_v25 }
 0x61d   : > { %v840_v28 = vsel %vm479_vm10, %v838_v27, -inf }
 0x61e   : > { %841 = vmax.xlane.f32.xlu0 %v840_v28  ;;  %v538_v30 = vpop.permute.xlu0 %537 }
 0x61f   : > { %v560_v31 = vsel %vm320_vm0, %v538_v30, 0 }
 0x620   : > { %578 = vmatpush.bf16.xpose.msra.mxu3 %v560_v31 }
 0x626   : > { %902 = vrot.lane.b32.xlu2 %v1384_v11, %s1289_s19 }
 0x628   : > { %579 = vmatpush.bf16.xpose.msra.mxu3 %v557_v34 }
 0x62e   : > { %529 = vrot.lane.b32.xlu2 %v1405_v26, %s1283_s25 }
 0x630   : > { %580 = vmatpush.bf16.xpose.msra.mxu3 %v554_v39 }
 0x632   : > { %904 = vrot.lane.b32.xlu0 %v1376_v9, %s1289_s19 }
 0x636   : > { %863 = vrot.lane.b32.xlu2 %v1371_v8, %s1290_s28 }
 0x638   : > { %581 = vmatpush.bf16.xpose.msra.mxu3 %v551_v42 }
 0x63e   : > { %900 = vrot.lane.b32.xlu2 %v1394_v14, %s1289_s19  ;;  %v939_v14 = vsel %vm320_vm0, %v913_v62, 0 }
 0x646   : > { %898 = vrot.lane.b32.xlu2 %v1401_v19, %s1289_s19 }
 0x681   : > { %v845_v11 = vpop.xlane.xlu2 %844 }
 0x682   : > { %v847_v43 = vsub.f32 %v839_v15, %v845_v11 }
 0x684   : > { %v850_v44 = vmul.f32 1.442695, %v847_v43 }
 0x686   : > { %1247 = vpow2.f32 %v850_v44 }
 0x689   : > { %v903_v45 = vpop.permute.xlu2 %902 }
 0x68a   : > { %v924_v58 = vsel %vm320_vm0, %v903_v45, 0 }
 0x68c   : > { %v1248_v46 = vpop.eup %1247 }
 0x68d   : > { %v855_v9 = vsel %vm479_vm10, %v1248_v46, 0.0 }
 0x68e   : > { %856 = vadd.xlane.f32.xlu0 %v855_v9 }
 0x691   : > { %v842_v47 = vpop.xlane.xlu0 %841  ;;  %v530_v48 = vpop.permute.xlu2 %529 }
 0x692   : > { %v846_v49 = vsub.f32 %v838_v27, %v842_v47  ;;  %1191 = vmatmul.msk.bf16.vlgmr.msra.gmra.mxu3 %vm320_vm0, %v530_v48 }
 0x694   : > { %v848_v50 = vmul.f32 1.442695, %v846_v49 }
 0x696   : > { %1249 = vpow2.f32 %v848_v50 }
 0x699   : > { %v864_v53 = vpop.permute.xlu2 %863 }
 0x69a   : > { %876 = vmatpush.bf16.msrb.mxu1 %v864_v53 }
 0x69c   : > { %v1250_v19 = vpop.eup %1249 }
 0x69d   : > { %v852_v54 = vsel %vm479_vm10, %v1250_v19, 0.0 }
 0x69e   : > { %941 = vmatpush.bf16.xpose.msra.mxu1 %v939_v14  ;;  %853 = vadd.xlane.f32.xlu1 %v852_v54 }
 0x6a1   : > { %v901_v59 = vpop.permute.xlu2 %900 }
 0x6a2   : > { %997 = vrot.lane.b32.xlu0 %v1371_v8, %s1291_s12  ;;  %v921_v61 = vsel %vm320_vm0, %v901_v59, 0 }
 0x6a4   : > { %v905_v6 = vpop.permute.xlu0 %904 }
 0x6a5   : > { %v927_v57 = vsel %vm320_vm0, %v905_v6, 0 }
 0x6a6   : > { %942 = vmatpush.bf16.xpose.msra.mxu1 %v936_v0 }
 0x6a9   : > { %v899_v62 = vpop.permute.xlu2 %898 }
 0x6aa   : > { %995 = vrot.lane.b32.xlu0 %v1434_v52, %s1289_s19  ;;  %v918_v63 = vsel %vm320_vm0, %v899_v62, 0 }
 0x6ae   : > { %943 = vmatpush.bf16.xpose.msra.mxu1 %v933_v55 }
 0x6b6   : > { %944 = vmatpush.bf16.xpose.msra.mxu1 %v930_v2 }
 0x6b7   : > { %896 = vrot.lane.b32.xlu1 %v1405_v26, %s1289_s19 }
 0x6be   : > { %945 = vmatpush.bf16.xpose.msra.mxu1 %v927_v57 }
 0x6c6   : > { %946 = vmatpush.bf16.xpose.msra.mxu1 %v924_v58 }
 0x6ce   : > { %947 = vmatpush.bf16.xpose.msra.mxu1 %v921_v61 }
 0x6d6   : > { %948 = vmatpush.bf16.xpose.msra.mxu1 %v918_v63 }
 0x701   : > { %v857_v3 = vpop.xlane.xlu0 %856 }
 0x702   : > { %1251 = vrcp.f32 %v857_v3 }
 0x708   : > { %v1252_v26 = vpop.eup %1251 }
 0x709   : > { %v861_v7 = vmul.f32 %v1252_v26, %v1248_v46 }
 0x711   : > { %v854_v52 = vpop.xlane.xlu1 %853 }
 0x712   : > { %1253 = vrcp.f32 %v854_v52 }
 0x714   : > { %v998_v20 = vpop.permute.xlu0 %997 }
 0x715   : > { %v583_v5 = vpop.f32.mrf.mxu3  ;;  %v1003_v21 = vsel %vm320_vm0, %v998_v20, 0 }
 0x716   : > { %590 = vrot.lane.b32.xlu2 %v583_v5, %s1280_s20  ;;  %1012 = vmatpush.bf16.xpose.msra.mxu0 %v1003_v21 }
 0x718   : > { %v1254_v4 = vpop.eup %1253 }
 0x719   : > { %v860_v10 = vmul.f32 %v1254_v4, %v1250_v19 }
 0x71b   : > { %v862_v12 = vpack.c.bf16 %v861_v7, %v860_v10 }
 0x71c   : > { %v996_v24 = vpop.permute.xlu0 %995 }
 0x71d   : > { %v585_v15 = vpop.f32.mrf.mxu3  ;;  %1196 = vmatmul.msk.bf16.vlgmr.msrb.gmra.mxu1 %vm479_vm10, %v862_v12  ;;  %1198 = vmatmul.msk.bf16.vlgmr.msra.gmra.mxu0 %vm320_vm0, %v996_v24 }
 0x71e   : > { %592 = vrot.lane.b32.xlu2 %v585_v15, %s1280_s20 }
 0x729   : > { %v897_v16 = vpop.permute.xlu1 %896 }
 0x72d   : > { %1197 = vmatmul.msk.bf16.vlgmr.msra.gmra.mxu1 %vm320_vm0, %v897_v16 }
 0x770   : > { %v591_v17 = vpop.permute.xlu2 %590 }
 0x771   : > { %v596_v18 = vsel %vm1415_vm1, %v591_v17, %v583_v5 }
 0x772   : > { %600 = vrot.lane.b32.xlu0 %v596_v18, %s1281_s21 }
 0x778   : > { %v593_v28 = vpop.permute.xlu2 %592 }
 0x779   : > { %v597_v31 = vsel %vm1422_vm2, %v593_v28, %v585_v15 }
 0x79a   : > { %v1628_v22 = vpop.f32.mrf.mxu1  ;;  %v1014_v3 = vpop.f32.mrf.mxu0 }
 0x7a2   : > { %v1631_v25 = vpop.f32.mrf.mxu1  ;;  %v1016_v10 = vpop.f32.mrf.mxu0 }
 0x7aa   : > { %v950_v27 = vpop.f32.mrf.mxu1 }
 0x7ab   : > { %957 = vrot.lane.b32.xlu2 %v950_v27, %s1280_s20 }
 0x7b2   : > { %v952_v30 = vpop.f32.mrf.mxu1 }
 0x7b3   : > { %959 = vrot.lane.b32.xlu1 %v952_v30, %s1280_s20  ;;  %602 = vrot.lane.b32.xlu2 %v597_v31, %s1281_s21 }
 0x7e4   : > { %v601_v32 = vpop.permute.xlu0 %600 }
 0x7e5   : > { %v606_v34 = vsel %vm397_vm4, %v601_v32, %v596_v18 }
 0x7e6   : > { %610 = vrot.lane.b32.xlu2 %v606_v34, %s1282_s24 }
 0x805   : > { %v958_v33 = vpop.permute.xlu2 %957 }
 0x806   : > { %v963_v38 = vsel %vm1415_vm1, %v958_v33, %v950_v27 }
 0x807   : > { %967 = vrot.lane.b32.xlu1 %v963_v38, %s1281_s21 }
 0x80d   : > { %v603_v39 = vpop.permute.xlu2 %602 }
 0x80e   : > { %v607_v40 = vsel %vm398_vm3, %v603_v39, %v597_v31 }
 0x80f   : > { %612 = vrot.lane.b32.xlu1 %v607_v40, %s1282_s24 }
 0x825   : > { %v960_v42 = vpop.permute.xlu1 %959 }
 0x826   : > { %v964_v11 = vsel %vm1422_vm2, %v960_v42, %v952_v30 }
 0x827   : > { %969 = vrot.lane.b32.xlu0 %v964_v11, %s1281_s21 }
 0x840   : > { %v611_v43 = vpop.permute.xlu2 %610 }
 0x841   : > { %v616_v44 = vsel %vm417_vm5, %v611_v43, %v606_v34 }
 0x842   : > { %620 = vrot.lane.b32.xlu1 %v616_v44, %s1283_s25 }
 0x879   : > { %v968_v36 = vpop.permute.xlu1 %967 }
 0x87a   : > { %v973_v45 = vsel %vm397_vm4, %v968_v36, %v963_v38  ;;  %v883_v38 = vpack.c.bf16 %v1628_v22, %v1628_v22 }
 0x87b   : > { %977 = vrot.lane.b32.xlu0 %v973_v45, %s1282_s24 }
 0x881   : > { %v613_v46 = vpop.permute.xlu1 %612 }
 0x882   : > { %v617_v9 = vsel %vm418_vm6, %v613_v46, %v607_v40 }
 0x883   : > { %622 = vrot.lane.b32.xlu0 %v617_v9, %s1283_s25 }
 0x899   : > { %v970_v41 = vpop.permute.xlu0 %969 }
 0x89a   : > { %v974_v47 = vsel %vm398_vm3, %v970_v41, %v964_v11 }
 0x89b   : > { %979 = vrot.lane.b32.xlu2 %v974_v47, %s1282_s24 }
 0x8b4   : > { %v621_v48 = vpop.permute.xlu1 %620 }
 0x8b5   : > { %v626_v49 = vsel %vm437_vm11, %v621_v48, %v616_v44 }
 0x8b6   : > { %v649_v56 = vadd.f32 %v1525_v35, %v626_v49 }
 0x8b8   : > { %v653_v50 = vmul.f32 0.35355338, %v649_v56 }
 0x8ba   : > { %v655_v14 = vsel %vm1471_vm9, -1e+30, %v653_v50 }
 0x8bb   : > { %v657_v53 = vsel %vm479_vm10, %v655_v14, -inf }
 0x8bc   : > { %658 = vmax.xlane.f32.xlu0 %v657_v53 }
 0x8ed   : > { %v978_v19 = vpop.permute.xlu0 %977 }
 0x8ee   : > { %v983_v51 = vsel %vm417_vm5, %v978_v19, %v973_v45 }
 0x8ef   : > { %987 = vrot.lane.b32.xlu2 %v983_v51, %s1283_s25 }
 0x8f5   : > { %v980_v54 = vpop.permute.xlu2 %979  ;;  %v623_v35 = vpop.permute.xlu0 %622 }
 0x8f6   : > { %v984_v0 = vsel %vm418_vm6, %v980_v54, %v974_v47  ;;  %v627_v55 = vsel %vm438_vm8, %v623_v35, %v617_v9  ;;  %v884_v54 = vpack.c.bf16 %v1631_v25, %v1631_v25 }
 0x8f7   : > { %989 = vrot.lane.b32.xlu1 %v984_v0, %s1283_s25  ;;  %v651_v2 = vadd.f32 %v1527_v37, %v627_v55 }
 0x8f9   : > { %v654_v6 = vmul.f32 0.35355338, %v651_v2 }
 0x8fb   : > { %v656_v57 = vsel %vm1471_vm9, -1e+30, %v654_v6 }
 0x8fc   : > { %v660_v60 = vsel %vm479_vm10, %v656_v57, -inf }
 0x918   : > { %661 = vmax.xlane.f32.xlu2 %v660_v60 }
 0x92f   : > { %v659_v58 = vpop.xlane.xlu0 %658 }
 0x930   : > { %v663_v59 = vsub.f32 %v655_v14, %v659_v58 }
 0x932   : > { %v665_v61 = vmul.f32 1.442695, %v663_v59 }
 0x934   : > { %1255 = vpow2.f32 %v665_v61 }
 0x93a   : > { %v1256_v1 = vpop.eup %1255 }
 0x93b   : > { %v669_v62 = vsel %vm479_vm10, %v1256_v1, 0.0 }
 0x93c   : > { %670 = vadd.xlane.f32.xlu0 %v669_v62 }
 0x949   : > { %v988_v63 = vpop.permute.xlu2 %987 }
 0x94a   : > { %v993_v37 = vsel %vm437_vm11, %v988_v63, %v983_v51 }
 0x94b   : > { %v1015_v52 = vadd.f32 %v1014_v3, %v993_v37 }
 0x94d   : > { %v1019_v5 = vmul.f32 0.35355338, %v1015_v52 }
 0x94f   : > { %v1021_v26 = vsel %vm1471_vm9, -1e+30, %v1019_v5 }
 0x950   : > { %v1023_v4 = vsel %vm479_vm10, %v1021_v26, -inf }
 0x951   : > { %1024 = vmax.xlane.f32.xlu1 %v1023_v4 }
 0x969   : > { %v990_v7 = vpop.permute.xlu1 %989 }
 0x96a   : > { %v994_v12 = vsel %vm438_vm8, %v990_v7, %v984_v0 }
 0x96b   : > { %v1017_v15 = vadd.f32 %v1016_v10, %v994_v12 }
 0x96d   : > { %v1020_v16 = vmul.f32 0.35355338, %v1017_v15 }
 0x96f   : > { %v1022_v17 = vsel %vm1471_vm9, -1e+30, %v1020_v16 }
 0x970   : > { %v1026_v29 = vsel %vm479_vm10, %v1022_v17, -inf }
 0x971   : > { %1027 = vmax.xlane.f32.xlu2 %v1026_v29 }
 0x989   : > { %680 = vrot.lane.b32.xlu2 %v1371_v8, %s1292_s13 }
 0x98b   : > { %v662_v18 = vpop.xlane.xlu2 %661 }
 0x98c   : > { %v664_v20 = vsub.f32 %v656_v57, %v662_v18 }
 0x98e   : > { %v667_v21 = vmul.f32 1.442695, %v664_v20 }
 0x990   : > { %1257 = vpow2.f32 %v667_v21 }
 0x996   : > { %v1258_v24 = vpop.eup %1257 }
 0x997   : > { %v672_v27 = vsel %vm479_vm10, %v1258_v24, 0.0 }
 0x998   : > { %673 = vadd.xlane.f32.xlu1 %v672_v27 }
 0x9af   : > { %v671_v11 = vpop.xlane.xlu0 %670 }
 0x9c4   : > { %v1025_v13 = vpop.xlane.xlu1 %1024 }
 0x9c5   : > { %v1029_v28 = vsub.f32 %v1021_v26, %v1025_v13 }
 0x9c7   : > { %v1031_v30 = vmul.f32 1.442695, %v1029_v28 }
 0x9c9   : > { %1259 = vpow2.f32 %v1031_v30 }
 0x9cf   : > { %v1260_v23 = vpop.eup %1259 }
 0x9d0   : > { %v1035_v31 = vsel %vm479_vm10, %v1260_v23, 0.0 }
 0x9d1   : > { %1036 = vadd.xlane.f32.xlu0 %v1035_v31 }
 0x9e4   : > { %v1028_v32 = vpop.xlane.xlu2 %1027 }
 0x9e5   : > { %v1030_v34 = vsub.f32 %v1022_v17, %v1028_v32  ;;  %1046 = vrot.lane.b32.xlu0 %v1371_v8, %s1293_s14 }
 0x9e7   : > { %v1033_v33 = vmul.f32 1.442695, %v1030_v34 }
 0x9e9   : > { %1261 = vpow2.f32 %v1033_v33 }
 0x9ea   : > { %1263 = vrcp.f32 %v671_v11 }
 0x9ec   : > { %v681_v42 = vpop.permute.xlu2 %680 }
 0x9ed   : > { %887 = vrot.lane.b32.xlu0 %v883_v38, %s1294_s15  ;;  %693 = vmatpush.bf16.msrb.mxu3 %v681_v42 }
 0x9ef   : > { %v1262_v39 = vpop.eup %1261 }
 0x9f0   : > { %v1038_v40 = vsel %vm479_vm10, %v1262_v39, 0.0  ;;  %v1264_v44 = vpop.eup %1263 }
 0x9f1   : > { %1039 = vadd.xlane.f32.xlu1 %v1038_v40  ;;  %v677_v36 = vmul.f32 %v1264_v44, %v1256_v1 }
 0xa0b   : > { %v674_v43 = vpop.xlane.xlu1 %673 }
 0xa0c   : > { %1265 = vrcp.f32 %v674_v43 }
 0xa12   : > { %v1266_v8 = vpop.eup %1265 }
 0xa13   : > { %v678_v45 = vmul.f32 %v1266_v8, %v1258_v24 }
 0xa15   : > { %v679_v46 = vpack.c.bf16 %v678_v45, %v677_v36 }
 0xa17   : > { %1193 = vmatmul.msk.bf16.vlgmr.msrb.gmra.mxu3 %vm479_vm10, %v679_v46 }
 0xa44   : > { %v1037_v22 = vpop.xlane.xlu0 %1036 }
 0xa45   : > { %1267 = vrcp.f32 %v1037_v22 }
 0xa4b   : > { %v1268_v47 = vpop.eup %1267 }
 0xa4c   : > { %v1043_v49 = vmul.f32 %v1268_v47, %v1260_v23 }
 0xa57   : > { %v1047_v9 = vpop.permute.xlu0 %1046 }
 0xa58   : > { %1059 = vmatpush.bf16.msra.mxu3 %v1047_v9 }
 0xa5f   : > { %v888_v60 = vpop.permute.xlu0 %887 }
 0xa64   : > { %v1040_v41 = vpop.xlane.xlu1 %1039 }
 0xa65   : > { %1269 = vrcp.f32 %v1040_v41 }
 0xa6b   : > { %v1270_v48 = vpop.eup %1269 }
 0xa6c   : > { %v1044_v56 = vmul.f32 %v1270_v48, %v1262_v39 }
 0xa6e   : > { %v1045_v50 = vpack.c.bf16 %v1044_v56, %v1043_v49 }
 0xa70   : > { %1199 = vmatmul.msk.bf16.vlgmr.msra.gmra.mxu3 %vm479_vm10, %v1045_v50 }
 0xa9a   : > { %v695_v14 = vpop.f32.mrf.mxu3 }
 0xa9b   : > { %v700_v53 = vpack.c.bf16 %v695_v14, %v695_v14 }
 0xa9d   : > { %704 = vrot.lane.b32.xlu1 %v700_v53, %s1295_s16 }
 0xaa2   : > { %v697_v19 = vpop.f32.mrf.mxu3 }
 0xaa3   : > { %v701_v51 = vpack.c.bf16 %v697_v19, %v697_v19 }
 0xaa5   : > { %706 = vrot.lane.b32.xlu2 %v701_v51, %s1295_s16 }
 0xaad   : > { %889 = vrot.lane.b32.xlu2 %v884_v54, %s1294_s15 }
 0xaf3   : > { %v1061_v0 = vpop.f32.mrf.mxu3 }
 0xaf4   : > { %v1066_v35 = vpack.c.bf16 %v1061_v0, %v1061_v0 }
 0xaf6   : > { %1070 = vrot.lane.b32.xlu0 %v1066_v35, %s1296_s17 }
 0xafb   : > { %v1063_v55 = vpop.f32.mrf.mxu3 }
 0xafc   : > { %v1067_v2 = vpack.c.bf16 %v1063_v55, %v1063_v55 }
 0xafe   : > { %1072 = vrot.lane.b32.xlu1 %v1067_v2, %s1296_s17 }
 0xaff   : > { %v707_v6 = vpop.permute.xlu2 %706 }
 0xb00   : > { %712 = vst.msk [vmem:[%s1521_s11 + $0x4] sm:$0xf] %vm710_vm13, %v707_v6 }
 0xb07   : > { %v890_v57 = vpop.permute.xlu2 %889 }
 0xb08   : > { %895 = vst.msk [vmem:[%s1521_s11 + $0x4] sm:$0xf] %vm893_vm14, %v890_v57 }
 0xb0f   : > { %v705_v25 = vpop.permute.xlu1 %704 }
 0xb10   : > { %711 = vst.msk [vmem:[%s1521_s11] sm:$0xf] %vm710_vm13, %v705_v25 }
 0xb11   : > { %894 = vst.msk [vmem:[%s1521_s11] sm:$0xf] %vm893_vm14, %v888_v60 }
 0xb68   : > { %v1071_v58 = vpop.permute.xlu0 %1070 }
 0xb69   : > { %1077 = vst.msk [vmem:[%s1521_s11] sm:$0xf] %vm1076_vm15, %v1071_v58 }
 0xb70   : > { %v1073_v59 = vpop.permute.xlu1 %1072 }
 0xb71   : > { %1078 = vst.msk [vmem:[%s1521_s11 + $0x4] sm:$0xf] %vm1076_vm15, %v1073_v59 }
 0xb72 PF: > { %s15_s18 = sadd.s32 1, %s1277_s18  }
 0xb73   : > { %p12_p4 = scmp.ge.s32.totalorder %s15_s18, 4  }
 0xb75   :  { %14 = sbr.rel (!%p12_p4) target bundleno = 1 (0x1), region = 73 }

</bundles_post_ra>
